<compile_context>
chip_gen: v6e
topology: v6e:2x2x1
jax: 0.10.0
libtpu: 0.0.40
codegen_flags: <defaults>
</compile_context>

<pallas_src>
import jax
import jax.numpy as jnp
from jax.experimental import pallas as pl
from jax.experimental.pallas import tpu as pltpu

N_EMBD = 768
N_POSITION = 2048
VOCAB_SIZE = 50257

TS = 128  # tokens per grid step (multiple of 8; output tile = (TS, N_EMBD))


def _embed_kernel(ids_ref, wte_hbm, wpe_ref, out_ref, gather_buf, sems):
    """One grid step: gather TS wte rows from HBM (double-buffered across
    steps), add the contiguous wpe tile, store a full (TS, n_embd) tile."""
    ts = out_ref.shape[0]
    h = pl.program_id(0)               # megacore half (parallel axis)
    t = pl.program_id(1)               # sequential tile within this half
    tiles_per_half = pl.num_programs(1)
    tile = h * tiles_per_half + t      # linear tile index into the sequence
    slot = t & 1                       # double-buffer slot for THIS tile

    def issue_tile(tile_idx, dst_slot):
        """Issue all TS row-gather DMAs for `tile_idx` into scratch slot
        `dst_slot`; 8 descriptors per loop iteration so scalar work co-issues."""
        base = tile_idx * ts

        @pl.loop(0, ts // 8)
        def _chunk(c):
            off = pl.multiple_of(c * 8, 8)
            for j in range(8):                       # unrolled at trace time
                tok = ids_ref[base + off + j]        # already clipped in wrapper
                pltpu.make_async_copy(
                    wte_hbm.at[pl.ds(tok, 1), :],
                    gather_buf.at[dst_slot, pl.ds(off + j, 1), :],
                    sems.at[dst_slot],
                ).start()

    # Prime this core's pipeline (fires exactly once per TensorCore).
    @pl.when(t == 0)
    def _():
        issue_tile(tile, slot)

    # Overlap: issue the NEXT tile's gathers into the other slot before we
    # block on this tile's slot.
    @pl.when(t + 1 < tiles_per_half)
    def _():
        issue_tile(tile + 1, 1 - slot)

    # Single aggregate wait: every row copy into this slot signalled
    # n_embd*4 bytes on sems[slot]; one (ts, n_embd)-sized descriptor waits
    # for the total byte count (valid because all copies are identical size).
    pltpu.make_async_copy(
        wte_hbm.at[pl.ds(0, ts), :],
        gather_buf.at[slot],
        sems.at[slot],
    ).wait()

    out_ref[...] = gather_buf[slot] + wpe_ref[...]


@jax.jit
def _embed_pallas(ids_padded, wte, wpe):
    padded = ids_padded.shape[0]
    n_embd = wte.shape[1]
    n_tiles = padded // TS
    # Split tiles across two halves when possible so the "parallel" outer axis
    # gives both v7x TensorCores work; single-TC chips just run it serially.
    halves = 2 if (n_tiles >= 2 and n_tiles % 2 == 0) else 1
    tiles_per_half = n_tiles // halves

    # Hoist the OOB guard out of the kernel's scalar critical path.
    ids_padded = jnp.clip(ids_padded, 0, wte.shape[0] - 1)

    grid_spec = pltpu.PrefetchScalarGridSpec(
        num_scalar_prefetch=1,  # token ids -> SMEM, read per-row inside kernel
        grid=(halves, tiles_per_half),
        in_specs=[
            # wte stays in HBM; rows are gathered manually with async copies.
            pl.BlockSpec(memory_space=pl.ANY),
            # wpe: positions are contiguous on prefill -> plain blocked tiles.
            pl.BlockSpec((TS, n_embd),
                         lambda h, t, ids: (h * tiles_per_half + t, 0)),
        ],
        out_specs=pl.BlockSpec((TS, n_embd),
                               lambda h, t, ids: (h * tiles_per_half + t, 0)),
        scratch_shapes=[
            pltpu.VMEM((2, TS, n_embd), wte.dtype),  # double-buffered gathers
            pltpu.SemaphoreType.DMA((2,)),           # one DMA sem per slot
        ],
    )
    return pl.pallas_call(
        _embed_kernel,
        out_shape=jax.ShapeDtypeStruct((padded, n_embd), wte.dtype),
        grid_spec=grid_spec,
        compiler_params=pltpu.CompilerParams(
            # Inner axis carries double-buffer state across steps -> arbitrary.
            dimension_semantics=("parallel", "arbitrary")),
    )(ids_padded, wte, wpe)


def embedding_forward(input_ids, wte, wpe, k_cache=None, v_cache=None):
    """Mirrors Embedding.forward of the PyTorch module. Returns (1, S, n_embd)."""
    input_ids = jnp.asarray(input_ids, dtype=jnp.int32)
    full_len = int(input_ids.shape[0])

    if k_cache is None or v_cache is None:
        # ---- prefill path: Pallas kernel over TS-token tiles ----
        seq_len = full_len
        padded = max(TS, ((seq_len + TS - 1) // TS) * TS)
        if padded > N_POSITION:
            raise ValueError(
                f"sequence length {seq_len} (padded {padded}) exceeds "
                f"n_position={N_POSITION}")
        ids_padded = jnp.pad(input_ids, (0, padded - seq_len))
        out = _embed_pallas(ids_padded, wte, wpe)
        return out[None, :seq_len, :]           # unsqueeze(0) -> (1, S, n_embd)

    # ---- decode path (KV cache): single token.  A grid=(1,) pallas_call is
    # pure launch overhead for ~6 KiB of traffic, so do it in plain XLA. ----
    tok = input_ids[full_len - 1]
    pos = full_len - 1
    row = wte[tok] + wpe[pos]
    return row[None, None, :]                   # (1, 1, n_embd)


if __name__ == "__main__":
    key = jax.random.PRNGKey(0)
    k_wte, k_wpe, k_ids, k_ids2 = jax.random.split(key, 4)

    # nn.Embedding default init ~ N(0, 1), built deterministically in-script.
    wte = jax.random.normal(k_wte, (VOCAB_SIZE, N_EMBD), dtype=jnp.float32)
    wpe = jax.random.normal(k_wpe, (N_POSITION, N_EMBD), dtype=jnp.float32)

    # --- no-cache (prefill) path, short sequence (single tile) ---
    seq = 8
    input_ids = jax.random.randint(k_ids, (seq,), 0, VOCAB_SIZE, dtype=jnp.int32)
    out = jax.block_until_ready(embedding_forward(input_ids, wte, wpe))
    ref = (wte[input_ids] + wpe[jnp.arange(seq)])[None]
    assert out.shape == (1, seq, N_EMBD), out.shape
    assert jnp.allclose(out, ref), "prefill path mismatch (short)"

    # --- prefill, multi-tile: exercises double buffering + megacore split ---
    seq2 = 500  # pads to 512 -> 4 tiles -> grid (2, 2)
    input_ids2 = jax.random.randint(k_ids2, (seq2,), 0, VOCAB_SIZE,
                                    dtype=jnp.int32)
    out2 = jax.block_until_ready(embedding_forward(input_ids2, wte, wpe))
    ref2 = (wte[input_ids2] + wpe[jnp.arange(seq2)])[None]
    assert out2.shape == (1, seq2, N_EMBD), out2.shape
    assert jnp.allclose(out2, ref2), "prefill path mismatch (multi-tile)"

    # --- KV-cache (decode) path: only last token, position len-1 ---
    out_dec = jax.block_until_ready(
        embedding_forward(input_ids, wte, wpe, k_cache=True, v_cache=True))
    ref_dec = (wte[input_ids[-1:]] + wpe[jnp.array([seq - 1])])[None]
    assert out_dec.shape == (1, 1, N_EMBD), out_dec.shape
    assert jnp.allclose(out_dec, ref_dec), "decode path mismatch"

    print("KERNEL_OK")
</pallas_src>

<mosaic_0001>
module attributes {stable_mosaic.version = 11 : i64} {
  func.func @_embed_kernel(%arg0: i32, %arg1: i32, %arg2: memref<128xi32, #tpu.memory_space<smem>>, %arg3: memref<50257x768xf32, #tpu.memory_space<any>>, %arg4: memref<128x768xf32, #tpu.memory_space<vmem>>, %arg5: memref<128x768xf32, #tpu.memory_space<vmem>>, %arg6: memref<2x128x768xf32, #tpu.memory_space<vmem>>, %arg7: memref<2x!tpu.dma_semaphore, #tpu.memory_space<semaphore_mem>>) attributes {dimension_semantics = [#tpu.dimension_semantics<parallel>, #tpu.dimension_semantics<arbitrary>], iteration_bounds = array<i64: 1, 1>, scalar_prefetch = 1 : i64, scratch_operands = 2 : i64, tpu.core_type = #tpu.core_type<tc>, window_params = [{}, {transform_indices = @transform_1, window_bounds = array<i64: 128, 768>}, {transform_indices = @transform_2, window_bounds = array<i64: 128, 768>}]} {
    %c1_i32 = arith.constant 1 : i32
    %0 = arith.muli %arg0, %c1_i32 : i32
    %1 = arith.addi %0, %arg1 : i32
    %c1_i32_0 = arith.constant 1 : i32
    %2 = arith.andi %arg1, %c1_i32_0 : i32
    %c0_i32 = arith.constant 0 : i32
    %3 = arith.cmpi eq, %arg1, %c0_i32 : i32
    %4 = arith.extui %3 : i1 to i32
    %c0_i32_1 = arith.constant 0 : i32
    %5 = arith.cmpi ne, %4, %c0_i32_1 : i32
    scf.if %5 {
      %c128_i32 = arith.constant 128 : i32
      %21 = arith.muli %1, %c128_i32 : i32
      %c0_i32_14 = arith.constant 0 : i32
      %c16_i32 = arith.constant 16 : i32
      %22 = arith.addi %c0_i32_14, %c16_i32 : i32
      %c1_i32_15 = arith.constant 1 : i32
      scf.for %arg8 = %c0_i32_14 to %22 step %c1_i32_15  : i32 {
        %c1_i32_17 = arith.constant 1 : i32
        %23 = arith.muli %arg8, %c1_i32_17 : i32
        %c0_i32_18 = arith.constant 0 : i32
        %24 = arith.addi %c0_i32_18, %23 : i32
        %c8_i32 = arith.constant 8 : i32
        %25 = arith.muli %24, %c8_i32 : i32
        %26 = tpu.assume_multiple %25, 8 : i32
        %27 = arith.addi %21, %26 : i32
        %c0_i32_19 = arith.constant 0 : i32
        %28 = arith.addi %27, %c0_i32_19 : i32
        %29 = arith.index_cast %28 : i32 to index
        %30 = memref.load %arg2[%29] : memref<128xi32, #tpu.memory_space<smem>>
        %c0_i32_20 = arith.constant 0 : i32
        %31 = arith.addi %26, %c0_i32_20 : i32
        %c0_i32_21 = arith.constant 0 : i32
        %32 = tpu.memref_slice %arg3[%30, %c0_i32_21] : memref<50257x768xf32, #tpu.memory_space<any>> -> memref<1x768xf32, #tpu.memory_space<any>>
        %c0_i32_22 = arith.constant 0 : i32
        %33 = tpu.memref_slice %arg6[%2, %31, %c0_i32_22] : memref<2x128x768xf32, #tpu.memory_space<vmem>> -> memref<1x1x768xf32, #tpu.memory_space<vmem>>
        %34 = tpu.memref_squeeze %33 : memref<1x1x768xf32, #tpu.memory_space<vmem>> -> memref<1x768xf32, #tpu.memory_space<vmem>>
        %35 = tpu.memref_slice %arg7[%2] : memref<2x!tpu.dma_semaphore, #tpu.memory_space<semaphore_mem>> -> memref<1x!tpu.dma_semaphore, #tpu.memory_space<semaphore_mem>>
        %36 = tpu.memref_squeeze %35 : memref<1x!tpu.dma_semaphore, #tpu.memory_space<semaphore_mem>> -> memref<!tpu.dma_semaphore, #tpu.memory_space<semaphore_mem>>
        tpu.enqueue_dma source(%32 : memref<1x768xf32, #tpu.memory_space<any>>) target(%34 : memref<1x768xf32, #tpu.memory_space<vmem>>) target_semaphore(%36 : memref<!tpu.dma_semaphore, #tpu.memory_space<semaphore_mem>>)
        %37 = arith.addi %21, %26 : i32
        %c1_i32_23 = arith.constant 1 : i32
        %38 = arith.addi %37, %c1_i32_23 : i32
        %39 = arith.index_cast %38 : i32 to index
        %40 = memref.load %arg2[%39] : memref<128xi32, #tpu.memory_space<smem>>
        %c1_i32_24 = arith.constant 1 : i32
        %41 = arith.addi %26, %c1_i32_24 : i32
        %c0_i32_25 = arith.constant 0 : i32
        %42 = tpu.memref_slice %arg3[%40, %c0_i32_25] : memref<50257x768xf32, #tpu.memory_space<any>> -> memref<1x768xf32, #tpu.memory_space<any>>
        %c0_i32_26 = arith.constant 0 : i32
        %43 = tpu.memref_slice %arg6[%2, %41, %c0_i32_26] : memref<2x128x768xf32, #tpu.memory_space<vmem>> -> memref<1x1x768xf32, #tpu.memory_space<vmem>>
        %44 = tpu.memref_squeeze %43 : memref<1x1x768xf32, #tpu.memory_space<vmem>> -> memref<1x768xf32, #tpu.memory_space<vmem>>
        %45 = tpu.memref_slice %arg7[%2] : memref<2x!tpu.dma_semaphore, #tpu.memory_space<semaphore_mem>> -> memref<1x!tpu.dma_semaphore, #tpu.memory_space<semaphore_mem>>
        %46 = tpu.memref_squeeze %45 : memref<1x!tpu.dma_semaphore, #tpu.memory_space<semaphore_mem>> -> memref<!tpu.dma_semaphore, #tpu.memory_space<semaphore_mem>>
        tpu.enqueue_dma source(%42 : memref<1x768xf32, #tpu.memory_space<any>>) target(%44 : memref<1x768xf32, #tpu.memory_space<vmem>>) target_semaphore(%46 : memref<!tpu.dma_semaphore, #tpu.memory_space<semaphore_mem>>)
        %47 = arith.addi %21, %26 : i32
        %c2_i32 = arith.constant 2 : i32
        %48 = arith.addi %47, %c2_i32 : i32
        %49 = arith.index_cast %48 : i32 to index
        %50 = memref.load %arg2[%49] : memref<128xi32, #tpu.memory_space<smem>>
        %c2_i32_27 = arith.constant 2 : i32
        %51 = arith.addi %26, %c2_i32_27 : i32
        %c0_i32_28 = arith.constant 0 : i32
        %52 = tpu.memref_slice %arg3[%50, %c0_i32_28] : memref<50257x768xf32, #tpu.memory_space<any>> -> memref<1x768xf32, #tpu.memory_space<any>>
        %c0_i32_29 = arith.constant 0 : i32
        %53 = tpu.memref_slice %arg6[%2, %51, %c0_i32_29] : memref<2x128x768xf32, #tpu.memory_space<vmem>> -> memref<1x1x768xf32, #tpu.memory_space<vmem>>
        %54 = tpu.memref_squeeze %53 : memref<1x1x768xf32, #tpu.memory_space<vmem>> -> memref<1x768xf32, #tpu.memory_space<vmem>>
        %55 = tpu.memref_slice %arg7[%2] : memref<2x!tpu.dma_semaphore, #tpu.memory_space<semaphore_mem>> -> memref<1x!tpu.dma_semaphore, #tpu.memory_space<semaphore_mem>>
        %56 = tpu.memref_squeeze %55 : memref<1x!tpu.dma_semaphore, #tpu.memory_space<semaphore_mem>> -> memref<!tpu.dma_semaphore, #tpu.memory_space<semaphore_mem>>
        tpu.enqueue_dma source(%52 : memref<1x768xf32, #tpu.memory_space<any>>) target(%54 : memref<1x768xf32, #tpu.memory_space<vmem>>) target_semaphore(%56 : memref<!tpu.dma_semaphore, #tpu.memory_space<semaphore_mem>>)
        %57 = arith.addi %21, %26 : i32
        %c3_i32 = arith.constant 3 : i32
        %58 = arith.addi %57, %c3_i32 : i32
        %59 = arith.index_cast %58 : i32 to index
        %60 = memref.load %arg2[%59] : memref<128xi32, #tpu.memory_space<smem>>
        %c3_i32_30 = arith.constant 3 : i32
        %61 = arith.addi %26, %c3_i32_30 : i32
        %c0_i32_31 = arith.constant 0 : i32
        %62 = tpu.memref_slice %arg3[%60, %c0_i32_31] : memref<50257x768xf32, #tpu.memory_space<any>> -> memref<1x768xf32, #tpu.memory_space<any>>
        %c0_i32_32 = arith.constant 0 : i32
        %63 = tpu.memref_slice %arg6[%2, %61, %c0_i32_32] : memref<2x128x768xf32, #tpu.memory_space<vmem>> -> memref<1x1x768xf32, #tpu.memory_space<vmem>>
        %64 = tpu.memref_squeeze %63 : memref<1x1x768xf32, #tpu.memory_space<vmem>> -> memref<1x768xf32, #tpu.memory_space<vmem>>
        %65 = tpu.memref_slice %arg7[%2] : memref<2x!tpu.dma_semaphore, #tpu.memory_space<semaphore_mem>> -> memref<1x!tpu.dma_semaphore, #tpu.memory_space<semaphore_mem>>
        %66 = tpu.memref_squeeze %65 : memref<1x!tpu.dma_semaphore, #tpu.memory_space<semaphore_mem>> -> memref<!tpu.dma_semaphore, #tpu.memory_space<semaphore_mem>>
        tpu.enqueue_dma source(%62 : memref<1x768xf32, #tpu.memory_space<any>>) target(%64 : memref<1x768xf32, #tpu.memory_space<vmem>>) target_semaphore(%66 : memref<!tpu.dma_semaphore, #tpu.memory_space<semaphore_mem>>)
        %67 = arith.addi %21, %26 : i32
        %c4_i32 = arith.constant 4 : i32
        %68 = arith.addi %67, %c4_i32 : i32
        %69 = arith.index_cast %68 : i32 to index
        %70 = memref.load %arg2[%69] : memref<128xi32, #tpu.memory_space<smem>>
        %c4_i32_33 = arith.constant 4 : i32
        %71 = arith.addi %26, %c4_i32_33 : i32
        %c0_i32_34 = arith.constant 0 : i32
        %72 = tpu.memref_slice %arg3[%70, %c0_i32_34] : memref<50257x768xf32, #tpu.memory_space<any>> -> memref<1x768xf32, #tpu.memory_space<any>>
        %c0_i32_35 = arith.constant 0 : i32
        %73 = tpu.memref_slice %arg6[%2, %71, %c0_i32_35] : memref<2x128x768xf32, #tpu.memory_space<vmem>> -> memref<1x1x768xf32, #tpu.memory_space<vmem>>
        %74 = tpu.memref_squeeze %73 : memref<1x1x768xf32, #tpu.memory_space<vmem>> -> memref<1x768xf32, #tpu.memory_space<vmem>>
        %75 = tpu.memref_slice %arg7[%2] : memref<2x!tpu.dma_semaphore, #tpu.memory_space<semaphore_mem>> -> memref<1x!tpu.dma_semaphore, #tpu.memory_space<semaphore_mem>>
        %76 = tpu.memref_squeeze %75 : memref<1x!tpu.dma_semaphore, #tpu.memory_space<semaphore_mem>> -> memref<!tpu.dma_semaphore, #tpu.memory_space<semaphore_mem>>
        tpu.enqueue_dma source(%72 : memref<1x768xf32, #tpu.memory_space<any>>) target(%74 : memref<1x768xf32, #tpu.memory_space<vmem>>) target_semaphore(%76 : memref<!tpu.dma_semaphore, #tpu.memory_space<semaphore_mem>>)
        %77 = arith.addi %21, %26 : i32
        %c5_i32 = arith.constant 5 : i32
        %78 = arith.addi %77, %c5_i32 : i32
        %79 = arith.index_cast %78 : i32 to index
        %80 = memref.load %arg2[%79] : memref<128xi32, #tpu.memory_space<smem>>
        %c5_i32_36 = arith.constant 5 : i32
        %81 = arith.addi %26, %c5_i32_36 : i32
        %c0_i32_37 = arith.constant 0 : i32
        %82 = tpu.memref_slice %arg3[%80, %c0_i32_37] : memref<50257x768xf32, #tpu.memory_space<any>> -> memref<1x768xf32, #tpu.memory_space<any>>
        %c0_i32_38 = arith.constant 0 : i32
        %83 = tpu.memref_slice %arg6[%2, %81, %c0_i32_38] : memref<2x128x768xf32, #tpu.memory_space<vmem>> -> memref<1x1x768xf32, #tpu.memory_space<vmem>>
        %84 = tpu.memref_squeeze %83 : memref<1x1x768xf32, #tpu.memory_space<vmem>> -> memref<1x768xf32, #tpu.memory_space<vmem>>
        %85 = tpu.memref_slice %arg7[%2] : memref<2x!tpu.dma_semaphore, #tpu.memory_space<semaphore_mem>> -> memref<1x!tpu.dma_semaphore, #tpu.memory_space<semaphore_mem>>
        %86 = tpu.memref_squeeze %85 : memref<1x!tpu.dma_semaphore, #tpu.memory_space<semaphore_mem>> -> memref<!tpu.dma_semaphore, #tpu.memory_space<semaphore_mem>>
        tpu.enqueue_dma source(%82 : memref<1x768xf32, #tpu.memory_space<any>>) target(%84 : memref<1x768xf32, #tpu.memory_space<vmem>>) target_semaphore(%86 : memref<!tpu.dma_semaphore, #tpu.memory_space<semaphore_mem>>)
        %87 = arith.addi %21, %26 : i32
        %c6_i32 = arith.constant 6 : i32
        %88 = arith.addi %87, %c6_i32 : i32
        %89 = arith.index_cast %88 : i32 to index
        %90 = memref.load %arg2[%89] : memref<128xi32, #tpu.memory_space<smem>>
        %c6_i32_39 = arith.constant 6 : i32
        %91 = arith.addi %26, %c6_i32_39 : i32
        %c0_i32_40 = arith.constant 0 : i32
        %92 = tpu.memref_slice %arg3[%90, %c0_i32_40] : memref<50257x768xf32, #tpu.memory_space<any>> -> memref<1x768xf32, #tpu.memory_space<any>>
        %c0_i32_41 = arith.constant 0 : i32
        %93 = tpu.memref_slice %arg6[%2, %91, %c0_i32_41] : memref<2x128x768xf32, #tpu.memory_space<vmem>> -> memref<1x1x768xf32, #tpu.memory_space<vmem>>
        %94 = tpu.memref_squeeze %93 : memref<1x1x768xf32, #tpu.memory_space<vmem>> -> memref<1x768xf32, #tpu.memory_space<vmem>>
        %95 = tpu.memref_slice %arg7[%2] : memref<2x!tpu.dma_semaphore, #tpu.memory_space<semaphore_mem>> -> memref<1x!tpu.dma_semaphore, #tpu.memory_space<semaphore_mem>>
        %96 = tpu.memref_squeeze %95 : memref<1x!tpu.dma_semaphore, #tpu.memory_space<semaphore_mem>> -> memref<!tpu.dma_semaphore, #tpu.memory_space<semaphore_mem>>
        tpu.enqueue_dma source(%92 : memref<1x768xf32, #tpu.memory_space<any>>) target(%94 : memref<1x768xf32, #tpu.memory_space<vmem>>) target_semaphore(%96 : memref<!tpu.dma_semaphore, #tpu.memory_space<semaphore_mem>>)
        %97 = arith.addi %21, %26 : i32
        %c7_i32 = arith.constant 7 : i32
        %98 = arith.addi %97, %c7_i32 : i32
        %99 = arith.index_cast %98 : i32 to index
        %100 = memref.load %arg2[%99] : memref<128xi32, #tpu.memory_space<smem>>
        %c7_i32_42 = arith.constant 7 : i32
        %101 = arith.addi %26, %c7_i32_42 : i32
        %c0_i32_43 = arith.constant 0 : i32
        %102 = tpu.memref_slice %arg3[%100, %c0_i32_43] : memref<50257x768xf32, #tpu.memory_space<any>> -> memref<1x768xf32, #tpu.memory_space<any>>
        %c0_i32_44 = arith.constant 0 : i32
        %103 = tpu.memref_slice %arg6[%2, %101, %c0_i32_44] : memref<2x128x768xf32, #tpu.memory_space<vmem>> -> memref<1x1x768xf32, #tpu.memory_space<vmem>>
        %104 = tpu.memref_squeeze %103 : memref<1x1x768xf32, #tpu.memory_space<vmem>> -> memref<1x768xf32, #tpu.memory_space<vmem>>
        %105 = tpu.memref_slice %arg7[%2] : memref<2x!tpu.dma_semaphore, #tpu.memory_space<semaphore_mem>> -> memref<1x!tpu.dma_semaphore, #tpu.memory_space<semaphore_mem>>
        %106 = tpu.memref_squeeze %105 : memref<1x!tpu.dma_semaphore, #tpu.memory_space<semaphore_mem>> -> memref<!tpu.dma_semaphore, #tpu.memory_space<semaphore_mem>>
        tpu.enqueue_dma source(%102 : memref<1x768xf32, #tpu.memory_space<any>>) target(%104 : memref<1x768xf32, #tpu.memory_space<vmem>>) target_semaphore(%106 : memref<!tpu.dma_semaphore, #tpu.memory_space<semaphore_mem>>)
      }
      %c16_i32_16 = arith.constant 16 : i32
    } else {
    }
    %c1_i32_2 = arith.constant 1 : i32
    %6 = arith.addi %arg1, %c1_i32_2 : i32
    %c1_i32_3 = arith.constant 1 : i32
    %7 = arith.cmpi slt, %6, %c1_i32_3 : i32
    %8 = arith.extui %7 : i1 to i32
    %c0_i32_4 = arith.constant 0 : i32
    %9 = arith.cmpi ne, %8, %c0_i32_4 : i32
    scf.if %9 {
      %c1_i32_14 = arith.constant 1 : i32
      %21 = arith.addi %1, %c1_i32_14 : i32
      %c1_i32_15 = arith.constant 1 : i32
      %22 = arith.subi %c1_i32_15, %2 : i32
      %c128_i32 = arith.constant 128 : i32
      %23 = arith.muli %21, %c128_i32 : i32
      %c0_i32_16 = arith.constant 0 : i32
      %c16_i32 = arith.constant 16 : i32
      %24 = arith.addi %c0_i32_16, %c16_i32 : i32
      %c1_i32_17 = arith.constant 1 : i32
      scf.for %arg8 = %c0_i32_16 to %24 step %c1_i32_17  : i32 {
        %c1_i32_19 = arith.constant 1 : i32
        %25 = arith.muli %arg8, %c1_i32_19 : i32
        %c0_i32_20 = arith.constant 0 : i32
        %26 = arith.addi %c0_i32_20, %25 : i32
        %c8_i32 = arith.constant 8 : i32
        %27 = arith.muli %26, %c8_i32 : i32
        %28 = tpu.assume_multiple %27, 8 : i32
        %29 = arith.addi %23, %28 : i32
        %c0_i32_21 = arith.constant 0 : i32
        %30 = arith.addi %29, %c0_i32_21 : i32
        %31 = arith.index_cast %30 : i32 to index
        %32 = memref.load %arg2[%31] : memref<128xi32, #tpu.memory_space<smem>>
        %c0_i32_22 = arith.constant 0 : i32
        %33 = arith.addi %28, %c0_i32_22 : i32
        %c0_i32_23 = arith.constant 0 : i32
        %34 = tpu.memref_slice %arg3[%32, %c0_i32_23] : memref<50257x768xf32, #tpu.memory_space<any>> -> memref<1x768xf32, #tpu.memory_space<any>>
        %c0_i32_24 = arith.constant 0 : i32
        %35 = tpu.memref_slice %arg6[%22, %33, %c0_i32_24] : memref<2x128x768xf32, #tpu.memory_space<vmem>> -> memref<1x1x768xf32, #tpu.memory_space<vmem>>
        %36 = tpu.memref_squeeze %35 : memref<1x1x768xf32, #tpu.memory_space<vmem>> -> memref<1x768xf32, #tpu.memory_space<vmem>>
        %37 = tpu.memref_slice %arg7[%22] : memref<2x!tpu.dma_semaphore, #tpu.memory_space<semaphore_mem>> -> memref<1x!tpu.dma_semaphore, #tpu.memory_space<semaphore_mem>>
        %38 = tpu.memref_squeeze %37 : memref<1x!tpu.dma_semaphore, #tpu.memory_space<semaphore_mem>> -> memref<!tpu.dma_semaphore, #tpu.memory_space<semaphore_mem>>
        tpu.enqueue_dma source(%34 : memref<1x768xf32, #tpu.memory_space<any>>) target(%36 : memref<1x768xf32, #tpu.memory_space<vmem>>) target_semaphore(%38 : memref<!tpu.dma_semaphore, #tpu.memory_space<semaphore_mem>>)
        %39 = arith.addi %23, %28 : i32
        %c1_i32_25 = arith.constant 1 : i32
        %40 = arith.addi %39, %c1_i32_25 : i32
        %41 = arith.index_cast %40 : i32 to index
        %42 = memref.load %arg2[%41] : memref<128xi32, #tpu.memory_space<smem>>
        %c1_i32_26 = arith.constant 1 : i32
        %43 = arith.addi %28, %c1_i32_26 : i32
        %c0_i32_27 = arith.constant 0 : i32
        %44 = tpu.memref_slice %arg3[%42, %c0_i32_27] : memref<50257x768xf32, #tpu.memory_space<any>> -> memref<1x768xf32, #tpu.memory_space<any>>
        %c0_i32_28 = arith.constant 0 : i32
        %45 = tpu.memref_slice %arg6[%22, %43, %c0_i32_28] : memref<2x128x768xf32, #tpu.memory_space<vmem>> -> memref<1x1x768xf32, #tpu.memory_space<vmem>>
        %46 = tpu.memref_squeeze %45 : memref<1x1x768xf32, #tpu.memory_space<vmem>> -> memref<1x768xf32, #tpu.memory_space<vmem>>
        %47 = tpu.memref_slice %arg7[%22] : memref<2x!tpu.dma_semaphore, #tpu.memory_space<semaphore_mem>> -> memref<1x!tpu.dma_semaphore, #tpu.memory_space<semaphore_mem>>
        %48 = tpu.memref_squeeze %47 : memref<1x!tpu.dma_semaphore, #tpu.memory_space<semaphore_mem>> -> memref<!tpu.dma_semaphore, #tpu.memory_space<semaphore_mem>>
        tpu.enqueue_dma source(%44 : memref<1x768xf32, #tpu.memory_space<any>>) target(%46 : memref<1x768xf32, #tpu.memory_space<vmem>>) target_semaphore(%48 : memref<!tpu.dma_semaphore, #tpu.memory_space<semaphore_mem>>)
        %49 = arith.addi %23, %28 : i32
        %c2_i32 = arith.constant 2 : i32
        %50 = arith.addi %49, %c2_i32 : i32
        %51 = arith.index_cast %50 : i32 to index
        %52 = memref.load %arg2[%51] : memref<128xi32, #tpu.memory_space<smem>>
        %c2_i32_29 = arith.constant 2 : i32
        %53 = arith.addi %28, %c2_i32_29 : i32
        %c0_i32_30 = arith.constant 0 : i32
        %54 = tpu.memref_slice %arg3[%52, %c0_i32_30] : memref<50257x768xf32, #tpu.memory_space<any>> -> memref<1x768xf32, #tpu.memory_space<any>>
        %c0_i32_31 = arith.constant 0 : i32
        %55 = tpu.memref_slice %arg6[%22, %53, %c0_i32_31] : memref<2x128x768xf32, #tpu.memory_space<vmem>> -> memref<1x1x768xf32, #tpu.memory_space<vmem>>
        %56 = tpu.memref_squeeze %55 : memref<1x1x768xf32, #tpu.memory_space<vmem>> -> memref<1x768xf32, #tpu.memory_space<vmem>>
        %57 = tpu.memref_slice %arg7[%22] : memref<2x!tpu.dma_semaphore, #tpu.memory_space<semaphore_mem>> -> memref<1x!tpu.dma_semaphore, #tpu.memory_space<semaphore_mem>>
        %58 = tpu.memref_squeeze %57 : memref<1x!tpu.dma_semaphore, #tpu.memory_space<semaphore_mem>> -> memref<!tpu.dma_semaphore, #tpu.memory_space<semaphore_mem>>
        tpu.enqueue_dma source(%54 : memref<1x768xf32, #tpu.memory_space<any>>) target(%56 : memref<1x768xf32, #tpu.memory_space<vmem>>) target_semaphore(%58 : memref<!tpu.dma_semaphore, #tpu.memory_space<semaphore_mem>>)
        %59 = arith.addi %23, %28 : i32
        %c3_i32 = arith.constant 3 : i32
        %60 = arith.addi %59, %c3_i32 : i32
        %61 = arith.index_cast %60 : i32 to index
        %62 = memref.load %arg2[%61] : memref<128xi32, #tpu.memory_space<smem>>
        %c3_i32_32 = arith.constant 3 : i32
        %63 = arith.addi %28, %c3_i32_32 : i32
        %c0_i32_33 = arith.constant 0 : i32
        %64 = tpu.memref_slice %arg3[%62, %c0_i32_33] : memref<50257x768xf32, #tpu.memory_space<any>> -> memref<1x768xf32, #tpu.memory_space<any>>
        %c0_i32_34 = arith.constant 0 : i32
        %65 = tpu.memref_slice %arg6[%22, %63, %c0_i32_34] : memref<2x128x768xf32, #tpu.memory_space<vmem>> -> memref<1x1x768xf32, #tpu.memory_space<vmem>>
        %66 = tpu.memref_squeeze %65 : memref<1x1x768xf32, #tpu.memory_space<vmem>> -> memref<1x768xf32, #tpu.memory_space<vmem>>
        %67 = tpu.memref_slice %arg7[%22] : memref<2x!tpu.dma_semaphore, #tpu.memory_space<semaphore_mem>> -> memref<1x!tpu.dma_semaphore, #tpu.memory_space<semaphore_mem>>
        %68 = tpu.memref_squeeze %67 : memref<1x!tpu.dma_semaphore, #tpu.memory_space<semaphore_mem>> -> memref<!tpu.dma_semaphore, #tpu.memory_space<semaphore_mem>>
        tpu.enqueue_dma source(%64 : memref<1x768xf32, #tpu.memory_space<any>>) target(%66 : memref<1x768xf32, #tpu.memory_space<vmem>>) target_semaphore(%68 : memref<!tpu.dma_semaphore, #tpu.memory_space<semaphore_mem>>)
        %69 = arith.addi %23, %28 : i32
        %c4_i32 = arith.constant 4 : i32
        %70 = arith.addi %69, %c4_i32 : i32
        %71 = arith.index_cast %70 : i32 to index
        %72 = memref.load %arg2[%71] : memref<128xi32, #tpu.memory_space<smem>>
        %c4_i32_35 = arith.constant 4 : i32
        %73 = arith.addi %28, %c4_i32_35 : i32
        %c0_i32_36 = arith.constant 0 : i32
        %74 = tpu.memref_slice %arg3[%72, %c0_i32_36] : memref<50257x768xf32, #tpu.memory_space<any>> -> memref<1x768xf32, #tpu.memory_space<any>>
        %c0_i32_37 = arith.constant 0 : i32
        %75 = tpu.memref_slice %arg6[%22, %73, %c0_i32_37] : memref<2x128x768xf32, #tpu.memory_space<vmem>> -> memref<1x1x768xf32, #tpu.memory_space<vmem>>
        %76 = tpu.memref_squeeze %75 : memref<1x1x768xf32, #tpu.memory_space<vmem>> -> memref<1x768xf32, #tpu.memory_space<vmem>>
        %77 = tpu.memref_slice %arg7[%22] : memref<2x!tpu.dma_semaphore, #tpu.memory_space<semaphore_mem>> -> memref<1x!tpu.dma_semaphore, #tpu.memory_space<semaphore_mem>>
        %78 = tpu.memref_squeeze %77 : memref<1x!tpu.dma_semaphore, #tpu.memory_space<semaphore_mem>> -> memref<!tpu.dma_semaphore, #tpu.memory_space<semaphore_mem>>
        tpu.enqueue_dma source(%74 : memref<1x768xf32, #tpu.memory_space<any>>) target(%76 : memref<1x768xf32, #tpu.memory_space<vmem>>) target_semaphore(%78 : memref<!tpu.dma_semaphore, #tpu.memory_space<semaphore_mem>>)
        %79 = arith.addi %23, %28 : i32
        %c5_i32 = arith.constant 5 : i32
        %80 = arith.addi %79, %c5_i32 : i32
        %81 = arith.index_cast %80 : i32 to index
        %82 = memref.load %arg2[%81] : memref<128xi32, #tpu.memory_space<smem>>
        %c5_i32_38 = arith.constant 5 : i32
        %83 = arith.addi %28, %c5_i32_38 : i32
        %c0_i32_39 = arith.constant 0 : i32
        %84 = tpu.memref_slice %arg3[%82, %c0_i32_39] : memref<50257x768xf32, #tpu.memory_space<any>> -> memref<1x768xf32, #tpu.memory_space<any>>
        %c0_i32_40 = arith.constant 0 : i32
        %85 = tpu.memref_slice %arg6[%22, %83, %c0_i32_40] : memref<2x128x768xf32, #tpu.memory_space<vmem>> -> memref<1x1x768xf32, #tpu.memory_space<vmem>>
        %86 = tpu.memref_squeeze %85 : memref<1x1x768xf32, #tpu.memory_space<vmem>> -> memref<1x768xf32, #tpu.memory_space<vmem>>
        %87 = tpu.memref_slice %arg7[%22] : memref<2x!tpu.dma_semaphore, #tpu.memory_space<semaphore_mem>> -> memref<1x!tpu.dma_semaphore, #tpu.memory_space<semaphore_mem>>
        %88 = tpu.memref_squeeze %87 : memref<1x!tpu.dma_semaphore, #tpu.memory_space<semaphore_mem>> -> memref<!tpu.dma_semaphore, #tpu.memory_space<semaphore_mem>>
        tpu.enqueue_dma source(%84 : memref<1x768xf32, #tpu.memory_space<any>>) target(%86 : memref<1x768xf32, #tpu.memory_space<vmem>>) target_semaphore(%88 : memref<!tpu.dma_semaphore, #tpu.memory_space<semaphore_mem>>)
        %89 = arith.addi %23, %28 : i32
        %c6_i32 = arith.constant 6 : i32
        %90 = arith.addi %89, %c6_i32 : i32
        %91 = arith.index_cast %90 : i32 to index
        %92 = memref.load %arg2[%91] : memref<128xi32, #tpu.memory_space<smem>>
        %c6_i32_41 = arith.constant 6 : i32
        %93 = arith.addi %28, %c6_i32_41 : i32
        %c0_i32_42 = arith.constant 0 : i32
        %94 = tpu.memref_slice %arg3[%92, %c0_i32_42] : memref<50257x768xf32, #tpu.memory_space<any>> -> memref<1x768xf32, #tpu.memory_space<any>>
        %c0_i32_43 = arith.constant 0 : i32
        %95 = tpu.memref_slice %arg6[%22, %93, %c0_i32_43] : memref<2x128x768xf32, #tpu.memory_space<vmem>> -> memref<1x1x768xf32, #tpu.memory_space<vmem>>
        %96 = tpu.memref_squeeze %95 : memref<1x1x768xf32, #tpu.memory_space<vmem>> -> memref<1x768xf32, #tpu.memory_space<vmem>>
        %97 = tpu.memref_slice %arg7[%22] : memref<2x!tpu.dma_semaphore, #tpu.memory_space<semaphore_mem>> -> memref<1x!tpu.dma_semaphore, #tpu.memory_space<semaphore_mem>>
        %98 = tpu.memref_squeeze %97 : memref<1x!tpu.dma_semaphore, #tpu.memory_space<semaphore_mem>> -> memref<!tpu.dma_semaphore, #tpu.memory_space<semaphore_mem>>
        tpu.enqueue_dma source(%94 : memref<1x768xf32, #tpu.memory_space<any>>) target(%96 : memref<1x768xf32, #tpu.memory_space<vmem>>) target_semaphore(%98 : memref<!tpu.dma_semaphore, #tpu.memory_space<semaphore_mem>>)
        %99 = arith.addi %23, %28 : i32
        %c7_i32 = arith.constant 7 : i32
        %100 = arith.addi %99, %c7_i32 : i32
        %101 = arith.index_cast %100 : i32 to index
        %102 = memref.load %arg2[%101] : memref<128xi32, #tpu.memory_space<smem>>
        %c7_i32_44 = arith.constant 7 : i32
        %103 = arith.addi %28, %c7_i32_44 : i32
        %c0_i32_45 = arith.constant 0 : i32
        %104 = tpu.memref_slice %arg3[%102, %c0_i32_45] : memref<50257x768xf32, #tpu.memory_space<any>> -> memref<1x768xf32, #tpu.memory_space<any>>
        %c0_i32_46 = arith.constant 0 : i32
        %105 = tpu.memref_slice %arg6[%22, %103, %c0_i32_46] : memref<2x128x768xf32, #tpu.memory_space<vmem>> -> memref<1x1x768xf32, #tpu.memory_space<vmem>>
        %106 = tpu.memref_squeeze %105 : memref<1x1x768xf32, #tpu.memory_space<vmem>> -> memref<1x768xf32, #tpu.memory_space<vmem>>
        %107 = tpu.memref_slice %arg7[%22] : memref<2x!tpu.dma_semaphore, #tpu.memory_space<semaphore_mem>> -> memref<1x!tpu.dma_semaphore, #tpu.memory_space<semaphore_mem>>
        %108 = tpu.memref_squeeze %107 : memref<1x!tpu.dma_semaphore, #tpu.memory_space<semaphore_mem>> -> memref<!tpu.dma_semaphore, #tpu.memory_space<semaphore_mem>>
        tpu.enqueue_dma source(%104 : memref<1x768xf32, #tpu.memory_space<any>>) target(%106 : memref<1x768xf32, #tpu.memory_space<vmem>>) target_semaphore(%108 : memref<!tpu.dma_semaphore, #tpu.memory_space<semaphore_mem>>)
      }
      %c16_i32_18 = arith.constant 16 : i32
    } else {
    }
    %c0_i32_5 = arith.constant 0 : i32
    %c0_i32_6 = arith.constant 0 : i32
    %10 = tpu.memref_slice %arg3[%c0_i32_5, %c0_i32_6] : memref<50257x768xf32, #tpu.memory_space<any>> -> memref<128x768xf32, #tpu.memory_space<any>>
    %c0_i32_7 = arith.constant 0 : i32
    %c0_i32_8 = arith.constant 0 : i32
    %11 = tpu.memref_slice %arg6[%2, %c0_i32_7, %c0_i32_8] : memref<2x128x768xf32, #tpu.memory_space<vmem>> -> memref<1x128x768xf32, #tpu.memory_space<vmem>>
    %12 = tpu.memref_squeeze %11 : memref<1x128x768xf32, #tpu.memory_space<vmem>> -> memref<128x768xf32, #tpu.memory_space<vmem>>
    %13 = tpu.memref_slice %arg7[%2] : memref<2x!tpu.dma_semaphore, #tpu.memory_space<semaphore_mem>> -> memref<1x!tpu.dma_semaphore, #tpu.memory_space<semaphore_mem>>
    %14 = tpu.memref_squeeze %13 : memref<1x!tpu.dma_semaphore, #tpu.memory_space<semaphore_mem>> -> memref<!tpu.dma_semaphore, #tpu.memory_space<semaphore_mem>>
    tpu.wait_dma2 semaphore(%14 : memref<!tpu.dma_semaphore, #tpu.memory_space<semaphore_mem>>) src(%10 : memref<128x768xf32, #tpu.memory_space<any>>) dst(%12 : memref<128x768xf32, #tpu.memory_space<vmem>>)
    %15 = arith.index_cast %2 : i32 to index
    %c0 = arith.constant 0 : index
    %c0_9 = arith.constant 0 : index
    %16 = vector.load %arg6[%15, %c0, %c0_9] : memref<2x128x768xf32, #tpu.memory_space<vmem>>, vector<1x128x768xf32>
    %17 = vector.shape_cast %16 : vector<1x128x768xf32> to vector<128x768xf32>
    %c0_10 = arith.constant 0 : index
    %c0_11 = arith.constant 0 : index
    %18 = vector.load %arg4[%c0_10, %c0_11] : memref<128x768xf32, #tpu.memory_space<vmem>>, vector<128x768xf32>
    %19 = arith.addf %17, %18 : vector<128x768xf32>
    %c0_12 = arith.constant 0 : index
    %c0_13 = arith.constant 0 : index
    %20 = vector.load %arg5[%c0_12, %c0_13] : memref<128x768xf32, #tpu.memory_space<vmem>>, vector<128x768xf32>
    tpu.vector_store %arg5[%c0_12, %c0_13], %19 {strides = array<i32>} : memref<128x768xf32, #tpu.memory_space<vmem>>, vector<128x768xf32>,
    return
  }
  func.func @transform_1(%arg0: i32, %arg1: i32, %arg2: memref<128xi32, #tpu.memory_space<smem>>) -> (i32, i32) {
    %c1_i32 = arith.constant 1 : i32
    %0 = arith.muli %arg0, %c1_i32 : i32
    %1 = arith.addi %0, %arg1 : i32
    %c0_i32 = arith.constant 0 : i32
    %c0_i32_0 = arith.constant 0 : i32
    return %1, %c0_i32 : i32, i32
  }
  func.func @transform_2(%arg0: i32, %arg1: i32, %arg2: memref<128xi32, #tpu.memory_space<smem>>) -> (i32, i32) {
    %c1_i32 = arith.constant 1 : i32
    %0 = arith.muli %arg0, %c1_i32 : i32
    %1 = arith.addi %0, %arg1 : i32
    %c0_i32 = arith.constant 0 : i32
    %c0_i32_0 = arith.constant 0 : i32
    return %1, %c0_i32 : i32, i32
  }
}

</mosaic_0001>

<bundles_post_ra>
// kernel: _embed_pallas.1
= control target key start
LH: loop header
LB: loop body
LE: loop exit
PB: predicated region body
PF: predicated region fallthrough
CT: control target
= control target key end

     0   :  { %s1503_s0 = inlined_call_operand.vmem [shape: s32[128], index: 0, kind: input, shape index: {}]   ;;  %s1504_s1 = inlined_call_operand.hbm [shape: f32[50257,768], index: 1, kind: input, shape index: {}]   ;;  %s1505_s2 = inlined_call_operand.hbm [shape: f32[2048,768], index: 2, kind: input, shape index: {}]   ;;  %s1506_s3 = inlined_call_operand.hbm [shape: f32[128,768], index: 3, kind: output, shape index: {}]  }
   0x1   :  { %s8_s14 = sshll.u32 %s1503_s0, 4  ;;  %s9_s14 = int_to_ptr.vmem [resolvable:$true] %s8_s14 }
   0x2   :  { %s1020_s15 = scalar_lea.vmem %s9_s14, 16  ;;  %p1025_p1 = scmp.lt.s32.totalorder %s9_s14, %s9_s14 }
   0x3   :  { %p1021_p0 = scmp.ne.s32.totalorder %s9_s14, %s1020_s15  ;;  %p1026_p2 = scmp.lt.s32.totalorder %s1020_s15, %s1020_s15 }
   0x5   :  { %p1027_p3 = por %p1026_p2, %p1025_p1 }
   0x7   :  { %p1028_p4 = pnand %p1027_p3, %p1021_p0 }
   0x9   :  { %1031 = shalt.err (!%p1028_p4)  }
   0xa   :  { %s1264_s16 = smov [#allocation5]  }
   0xb   :  { %11 = dma.vmem_to_smem %s9_s14, 16, %s1264_s16, [#allocation4] }
   0xc   :  { %1252 = dma.done.wait [#allocation4], 16 }
   0xd   :  { %1253 = vsyncadd [#allocation4], 4294967280 }
   0xe   :  { %13 = sfence }
   0xf   :  { %14 = vsyncpa [#allocation7], 0 }
  0x10   :  { %15 = vsyncpa [#allocation8], 0  ;;  %s1265_s17 = smov [#allocation6]  }
  0x11   :  { %s26_s18 = sshll.u32 %s1265_s17, 4  ;;  %s27_s18 = int_to_ptr.vmem [resolvable:$true] %s26_s18 }
  0x12   :  { %s1040_s19 = scalar_lea.vmem %s27_s18, 12288  ;;  %p1045_p6 = scmp.lt.s32.totalorder %s27_s18, %s27_s18 }
  0x13   :  { %p1041_p5 = scmp.ne.s32.totalorder %s27_s18, %s1040_s19  ;;  %p1046_p7 = scmp.lt.s32.totalorder %s1040_s19, %s1040_s19 }
  0x15   :  { %p1047_p8 = por %p1046_p7, %p1045_p6 }
  0x17   :  { %p1048_p9 = pnand %p1047_p8, %p1041_p5 }
  0x19   :  { %1051 = shalt.err (!%p1048_p9)
}
  0x1a   :  { %s1507_s0 = smov 768   ;;  %s1508_s20 = smov 48  }
  0x1b   :  { %32 = dma.hbm_to_vmem [thread:$0]  %s1505_s2, 12288, %s27_s18, [#allocation7], %s1507_s0, %s1507_s0, %s1508_s20  }
  0x1c   :  { %1254 = dma.done.wait [#allocation7], 12288  }
  0x1d   :  { %1255 = vsyncadd [#allocation7], 4294955008  ;;  %s1301_s23 = smov 0  }
  0x1e LB: > { %s1307_s24 = sshll.u32 %s1262_s23, 3  ;;  %s1262_s23 = sphi %s1301_s23, %s52_s23  }
  0x1f   : > { %s55_s25 = sld [smem:[#allocation5 + %s1307_s24]]  ;;  %s62_s26 = sshrl.u32 %s1307_s24, 3 }
  0x20   : > { %s63_s2 = sand.u32 7, %s1307_s24   ;;  %s64_s27 = smul.u32 48, %s62_s26 }
  0x21   : > { %s1313_s28 = sadd.s32 1, %s1307_s24  ;;  %s1316_s29 = sadd.s32 2, %s1307_s24 }
  0x22   : > { %s65_s30 = sadd.s32 %s64_s27, %s63_s2  ;;  %s1319_s4 = sld [smem:[#allocation5 + %s1313_s28]] }
  0x23   : > { %s84_s5 = sshrl.u32 %s1313_s28, 3  ;;  %s68_s6 = scalar_lea.vmem [#allocation2], %s65_s30 }
  0x24   : > { %s71_s7 = sshll.u32 %s68_s6, 4  ;;  %s85_s8 = sand.u32 7, %s1313_s28   ;;  %s1323_s7 = int_to_ptr.vmem [resolvable:$true] %s71_s7 }
  0x25   : > { %s56_s9 = sshrl.u32 %s55_s25, 3  ;;  %s57_s10 = sand.u32 7, %s55_s25  }
  0x26   : > { %s58_s11 = smul.u32 48, %s56_s9  ;;  %s1328_s13 = sld [smem:[#allocation5 + %s1316_s29]] }
  0x27   : > { %s1325_s12 = smul.u32 48, %s84_s5  ;;  %s1338_s27 = scalar_lea.hbm %s1504_s1, 4825344 }
  0x28   : > { %s59_s14 = sadd.s32 %s58_s11, %s57_s10  ;;  %s78_s15 = sshrl.u32 %s1319_s4, 3 }
  0x29   : > { %s978_s16 = sshll.u32 %s59_s14, 4  ;;  %s79_s17 = sand.u32 7, %s1319_s4  }
  0x2a   : > { %s61_s21 = scalar_lea.hbm %s1504_s1, %s978_s16  ;;  %s80_s22 = smul.u32 48, %s78_s15 }
  0x2b   : > { %s1052_s26 = scalar_lea.hbm %s61_s21, 96  ;;  %p1055_p11 = scmp.lt.s32.totalorder %s61_s21, %s1504_s1 }
  0x2c   : > { %p1053_p10 = scmp.ne.s32.totalorder %s61_s21, %s1052_s26  ;;  %p1056_p12 = scmp.lt.s32.totalorder %s1338_s27, %s1052_s26 }
  0x2e   : > { %p1057_p13 = por %p1056_p12, %p1055_p11 }
  0x30   : > { %p1058_p0 = pnand %p1057_p13, %p1053_p10 }
  0x32   : > { %1061 = shalt.err (!%p1058_p0)  }
  0x33   : > { %s1062_s4 = scalar_lea.vmem %s1323_s7, 96  ;;  %s1268_s6 = smov [#allocation2]  }
  0x34   : > { %p1063_p1 = scmp.ne.s32.totalorder %s1323_s7, %s1062_s4  ;;  %s1064_s9 = sshll.u32 %s1268_s6, 4  ;;  %s1346_s9 = int_to_ptr.vmem [resolvable:$false] %s1064_s9 }
  0x35   : > { %s1349_s10 = scalar_lea.vmem %s1346_s9, 24576  ;;  %p1067_p2 = scmp.lt.s32.totalorder %s1323_s7, %s1346_s9 }
  0x36   : > { %p1068_p3 = scmp.lt.s32.totalorder %s1349_s10, %s1062_s4 }
  0x38   : > { %p1069_p4 = por %p1068_p3, %p1067_p2 }
  0x3a   : > { %p1070_p5 = pnand %p1069_p4, %p1063_p1 }
  0x3c   : > { %1073 = shalt.err (!%p1070_p5)  }
  0x3d   : > { %s1269_s11 = smov 128   ;;  %s1270_s14 = smov 1  }
  0x3e   : > { %74 = dma.hbm_to_vmem [thread:$0]  %s61_s21, 96, %s1323_s7, [#allocation3], %s1269_s11, %s1269_s11, %s1270_s14 }
  0x3f   : > { %s81_s15 = sadd.s32 %s80_s22, %s79_s17  ;;  %s87_s16 = sadd.s32 %s1325_s12, %s85_s8 }
  0x40   : > { %s979_s18 = sshll.u32 %s81_s15, 4  ;;  %s89_s25 = scalar_lea.vmem [#allocation2], %s87_s16 }
  0x41   : > { %s83_s2 = scalar_lea.hbm %s1504_s1, %s979_s18  ;;  %s91_s30 = sshll.u32 %s89_s25, 4  ;;  %s92_s30 = int_to_ptr.vmem [resolvable:$true] %s91_s30 }
  0x42   : > { %s98_s5 = sshrl.u32 %s1328_s13, 3  ;;  %s1074_s4 = scalar_lea.hbm %s83_s2, 96 }
  0x43   : > { %p1075_p6 = scmp.ne.s32.totalorder %s83_s2, %s1074_s4  ;;  %p1077_p7 = scmp.lt.s32.totalorder %s83_s2, %s1504_s1 }
  0x44   : > { %p1078_p8 = scmp.lt.s32.totalorder %s1338_s27, %s1074_s4 }
  0x46   : > { %p1079_p9 = por %p1078_p8, %p1077_p7 }
  0x48   : > { %p1080_p10 = pnand %p1079_p9, %p1075_p6 }
  0x4a   : > { %1083 = shalt.err (!%p1080_p10)  }
  0x4b   : > { %s1084_s28 = scalar_lea.vmem %s92_s30, 96  ;;  %p1089_p12 = scmp.lt.s32.totalorder %s92_s30, %s1346_s9 }
  0x4c   : > { %p1085_p11 = scmp.ne.s32.totalorder %s92_s30, %s1084_s28  ;;  %p1090_p13 = scmp.lt.s32.totalorder %s1349_s10, %s1084_s28 }
  0x4e   : > { %p1091_p0 = por %p1090_p13, %p1089_p12 }
  0x50   : > { %p1092_p1 = pnand %p1091_p0, %p1085_p11 }
  0x52   : > { %1095 = shalt.err (!%p1092_p1)  }
  0x53   : > { %94 = dma.hbm_to_vmem [thread:$0]  %s83_s2, 96, %s92_s30, [#allocation3], %s1269_s11, %s1269_s11, %s1270_s14 }
  0x54   : > { %s99_s0 = sand.u32 7, %s1328_s13   ;;  %s100_s7 = smul.u32 48, %s98_s5 }
  0x55   : > { %s104_s8 = sshrl.u32 %s1316_s29, 3  ;;  %s105_s12 = sand.u32 7, %s1316_s29  }
  0x56   : > { %s101_s17 = sadd.s32 %s100_s7, %s99_s0  ;;  %s106_s21 = smul.u32 48, %s104_s8 }
  0x57   : > { %s980_s22 = sshll.u32 %s101_s17, 4  ;;  %s1378_s15 = sadd.s32 3, %s1307_s24 }
  0x58   : > { %s103_s19 = scalar_lea.hbm %s1504_s1, %s980_s22  ;;  %s107_s26 = sadd.s32 %s106_s21, %s105_s12 }
  0x59   : > { %s1384_s25 = sld [smem:[#allocation5 + %s1378_s15]]  ;;  %s109_s13 = scalar_lea.vmem [#allocation2], %s107_s26 }
  0x5a   : > { %s111_s2 = sshll.u32 %s109_s13, 4  ;;  %s124_s30 = sshrl.u32 %s1378_s15, 3  ;;  %s112_s2 = int_to_ptr.vmem [resolvable:$true] %s111_s2 }
  0x5b   : > { %s125_s29 = sand.u32 7, %s1378_s15   ;;  %s1096_s5 = scalar_lea.hbm %s103_s19, 96 }
  0x5c   : > { %p1097_p2 = scmp.ne.s32.totalorder %s103_s19, %s1096_s5  ;;  %p1099_p3 = scmp.lt.s32.totalorder %s103_s19, %s1504_s1 }
  0x5d   : > { %p1100_p4 = scmp.lt.s32.totalorder %s1338_s27, %s1096_s5 }
  0x5f   : > { %p1101_p5 = por %p1100_p4, %p1099_p3 }
  0x61   : > { %p1102_p6 = pnand %p1101_p5, %p1097_p2 }
  0x63   : > { %1105 = shalt.err (!%p1102_p6)  }
  0x64   : > { %s1106_s28 = scalar_lea.vmem %s112_s2, 96  ;;  %p1111_p8 = scmp.lt.s32.totalorder %s112_s2, %s1346_s9 }
  0x65   : > { %p1107_p7 = scmp.ne.s32.totalorder %s112_s2, %s1106_s28  ;;  %p1112_p9 = scmp.lt.s32.totalorder %s1349_s10, %s1106_s28 }
  0x67   : > { %p1113_p10 = por %p1112_p9, %p1111_p8 }
  0x69   : > { %p1114_p11 = pnand %p1113_p10, %p1107_p7 }
  0x6b   : > { %1117 = shalt.err (!%p1114_p11)  }
  0x6c   : > { %114 = dma.hbm_to_vmem [thread:$0]  %s103_s19, 96, %s112_s2, [#allocation3], %s1269_s11, %s1269_s11, %s1270_s14 }
  0x6d   : > { %s126_s0 = smul.u32 48, %s124_s30  ;;  %s1398_s7 = sadd.s32 4, %s1307_s24 }
  0x6e   : > { %s1401_s8 = sld [smem:[#allocation5 + %s1398_s7]]  ;;  %s144_s12 = sshrl.u32 %s1398_s7, 3 }
  0x6f   : > { %s118_s17 = sshrl.u32 %s1384_s25, 3  ;;  %s119_s21 = sand.u32 7, %s1384_s25  }
  0x70   : > { %s120_s22 = smul.u32 48, %s118_s17  ;;  %s127_s15 = sadd.s32 %s126_s0, %s125_s29 }
  0x71   : > { %s145_s16 = sand.u32 7, %s1398_s7   ;;  %s129_s26 = scalar_lea.vmem [#allocation2], %s127_s15 }
  0x72   : > { %s121_s18 = sadd.s32 %s120_s22, %s119_s21  ;;  %s131_s13 = sshll.u32 %s129_s26, 4  ;;  %s132_s13 = int_to_ptr.vmem [resolvable:$true] %s131_s13 }
  0x73   : > { %s981_s19 = sshll.u32 %s121_s18, 4 }
  0x74   : > { %s123_s5 = scalar_lea.hbm %s1504_s1, %s981_s19  ;;  %s138_s4 = sshrl.u32 %s1401_s8, 3 }
  0x75   : > { %s1118_s6 = scalar_lea.hbm %s123_s5, 96  ;;  %p1121_p13 = scmp.lt.s32.totalorder %s123_s5, %s1504_s1 }
  0x76   : > { %p1119_p12 = scmp.ne.s32.totalorder %s123_s5, %s1118_s6  ;;  %p1122_p0 = scmp.lt.s32.totalorder %s1338_s27, %s1118_s6 }
  0x78   : > { %p1123_p1 = por %p1122_p0, %p1121_p13 }
  0x7a   : > { %p1124_p2 = pnand %p1123_p1, %p1119_p12 }
  0x7c   : > { %1127 = shalt.err (!%p1124_p2)  }
  0x7d   : > { %s1128_s25 = scalar_lea.vmem %s132_s13, 96  ;;  %p1133_p4 = scmp.lt.s32.totalorder %s132_s13, %s1346_s9 }
  0x7e   : > { %p1129_p3 = scmp.ne.s32.totalorder %s132_s13, %s1128_s25  ;;  %p1134_p5 = scmp.lt.s32.totalorder %s1349_s10, %s1128_s25 }
  0x80   : > { %p1135_p6 = por %p1134_p5, %p1133_p4 }
  0x82   : > { %p1136_p7 = pnand %p1135_p6, %p1129_p3 }
  0x84   : > { %1139 = shalt.err (!%p1136_p7)  }
  0x85   : > { %134 = dma.hbm_to_vmem [thread:$0]  %s123_s5, 96, %s132_s13, [#allocation3], %s1269_s11, %s1269_s11, %s1270_s14 }
  0x86   : > { %s139_s20 = sand.u32 7, %s1401_s8   ;;  %s140_s29 = smul.u32 48, %s138_s4 }
  0x87   : > { %s146_s0 = smul.u32 48, %s144_s12  ;;  %s1424_s17 = sadd.s32 5, %s1307_s24 }
  0x88   : > { %s141_s21 = sadd.s32 %s140_s29, %s139_s20  ;;  %s1427_s22 = sld [smem:[#allocation5 + %s1424_s17]] }
  0x89   : > { %s982_s15 = sshll.u32 %s141_s21, 4  ;;  %s147_s18 = sadd.s32 %s146_s0, %s145_s16 }
  0x8a   : > { %s143_s13 = scalar_lea.hbm %s1504_s1, %s982_s15  ;;  %s149_s8 = scalar_lea.vmem [#allocation2], %s147_s18 }
  0x8b   : > { %s151_s2 = sshll.u32 %s149_s8, 4  ;;  %s164_s30 = sshrl.u32 %s1424_s17, 3  ;;  %s152_s2 = int_to_ptr.vmem [resolvable:$true] %s151_s2 }
  0x8c   : > { %s165_s12 = sand.u32 7, %s1424_s17   ;;  %s1140_s5 = scalar_lea.hbm %s143_s13, 96 }
  0x8d   : > { %p1141_p8 = scmp.ne.s32.totalorder %s143_s13, %s1140_s5  ;;  %p1143_p9 = scmp.lt.s32.totalorder %s143_s13, %s1504_s1 }
  0x8e   : > { %p1144_p10 = scmp.lt.s32.totalorder %s1338_s27, %s1140_s5 }
  0x90   : > { %p1145_p11 = por %p1144_p10, %p1143_p9 }
  0x92   : > { %p1146_p12 = pnand %p1145_p11, %p1141_p8 }
  0x94   : > { %1149 = shalt.err (!%p1146_p12)  }
  0x95   : > { %s1150_s7 = scalar_lea.vmem %s152_s2, 96  ;;  %p1155_p0 = scmp.lt.s32.totalorder %s152_s2, %s1346_s9 }
  0x96   : > { %p1151_p13 = scmp.ne.s32.totalorder %s152_s2, %s1150_s7  ;;  %p1156_p1 = scmp.lt.s32.totalorder %s1349_s10, %s1150_s7 }
  0x98   : > { %p1157_p2 = por %p1156_p1, %p1155_p0 }
  0x9a   : > { %p1158_p3 = pnand %p1157_p2, %p1151_p13 }
  0x9c   : > { %1161 = shalt.err (!%p1158_p3)  }
  0x9d   : > { %154 = dma.hbm_to_vmem [thread:$0]  %s143_s13, 96, %s152_s2, [#allocation3], %s1269_s11, %s1269_s11, %s1270_s14 }
  0x9e   : > { %s158_s16 = sshrl.u32 %s1427_s22, 3  ;;  %s159_s28 = sand.u32 7, %s1427_s22  }
  0x9f   : > { %s160_s25 = smul.u32 48, %s158_s16  ;;  %s1448_s20 = sadd.s32 6, %s1307_s24 }
  0xa0   : > { %s166_s29 = smul.u32 48, %s164_s30  ;;  %s1451_s0 = sld [smem:[#allocation5 + %s1448_s20]] }
  0xa1   : > { %s161_s17 = sadd.s32 %s160_s25, %s159_s28  ;;  %s184_s21 = sshrl.u32 %s1448_s20, 3 }
  0xa2   : > { %s983_s15 = sshll.u32 %s161_s17, 4  ;;  %s167_s18 = sadd.s32 %s166_s29, %s165_s12 }
  0xa3   : > { %s163_s13 = scalar_lea.hbm %s1504_s1, %s983_s15  ;;  %s169_s8 = scalar_lea.vmem [#allocation2], %s167_s18 }
  0xa4   : > { %s171_s22 = sshll.u32 %s169_s8, 4  ;;  %s185_s2 = sand.u32 7, %s1448_s20   ;;  %s172_s22 = int_to_ptr.vmem [resolvable:$true] %s171_s22 }
  0xa5   : > { %s186_s5 = smul.u32 48, %s184_s21  ;;  %s1162_s4 = scalar_lea.hbm %s163_s13, 96 }
  0xa6   : > { %p1163_p4 = scmp.ne.s32.totalorder %s163_s13, %s1162_s4  ;;  %p1165_p5 = scmp.lt.s32.totalorder %s163_s13, %s1504_s1 }
  0xa7   : > { %p1166_p6 = scmp.lt.s32.totalorder %s1338_s27, %s1162_s4 }
  0xa9   : > { %p1167_p7 = por %p1166_p6, %p1165_p5 }
  0xab   : > { %p1168_p8 = pnand %p1167_p7, %p1163_p4 }
  0xad   : > { %1171 = shalt.err (!%p1168_p8)  }
  0xae   : > { %s1172_s30 = scalar_lea.vmem %s172_s22, 96  ;;  %p1177_p10 = scmp.lt.s32.totalorder %s172_s22, %s1346_s9 }
  0xaf   : > { %p1173_p9 = scmp.ne.s32.totalorder %s172_s22, %s1172_s30  ;;  %p1178_p11 = scmp.lt.s32.totalorder %s1349_s10, %s1172_s30 }
  0xb1   : > { %p1179_p12 = por %p1178_p11, %p1177_p10 }
  0xb3   : > { %p1180_p13 = pnand %p1179_p12, %p1173_p9 }
  0xb5   : > { %1183 = shalt.err (!%p1180_p13)  }
  0xb6   : > { %174 = dma.hbm_to_vmem [thread:$0]  %s163_s13, 96, %s172_s22, [#allocation3], %s1269_s11, %s1269_s11, %s1270_s14 }
  0xb7   : > { %s178_s12 = sshrl.u32 %s1451_s0, 3  ;;  %s179_s16 = sand.u32 7, %s1451_s0  }
  0xb8   : > { %s180_s28 = smul.u32 48, %s178_s12  ;;  %s187_s25 = sadd.s32 %s186_s5, %s185_s2 }
  0xb9   : > { %s195_s20 = sadd.s32 7, %s1307_s24  ;;  %s189_s17 = scalar_lea.vmem [#allocation2], %s187_s25 }
  0xba   : > { %s181_s29 = sadd.s32 %s180_s28, %s179_s16  ;;  %s191_s21 = sshll.u32 %s189_s17, 4  ;;  %s192_s21 = int_to_ptr.vmem [resolvable:$true] %s191_s21 }
  0xbb   : > { %s984_s15 = sshll.u32 %s181_s29, 4  ;;  %s196_s8 = sld [smem:[#allocation5 + %s195_s20]] }
  0xbc   : > { %s183_s19 = scalar_lea.hbm %s1504_s1, %s984_s15 }
  0xbd   : > { %s1184_s4 = scalar_lea.hbm %s183_s19, 96  ;;  %p1187_p1 = scmp.lt.s32.totalorder %s183_s19, %s1504_s1 }
  0xbe   : > { %p1185_p0 = scmp.ne.s32.totalorder %s183_s19, %s1184_s4  ;;  %p1188_p2 = scmp.lt.s32.totalorder %s1338_s27, %s1184_s4 }
  0xc0   : > { %p1189_p3 = por %p1188_p2, %p1187_p1 }
  0xc2   : > { %p1190_p4 = pnand %p1189_p3, %p1185_p0 }
  0xc4   : > { %1193 = shalt.err (!%p1190_p4)  }
  0xc5   : > { %s1194_s24 = scalar_lea.vmem %s192_s21, 96  ;;  %p1199_p6 = scmp.lt.s32.totalorder %s192_s21, %s1346_s9 }
  0xc6   : > { %p1195_p5 = scmp.ne.s32.totalorder %s192_s21, %s1194_s24  ;;  %p1200_p7 = scmp.lt.s32.totalorder %s1349_s10, %s1194_s24 }
  0xc8   : > { %p1201_p8 = por %p1200_p7, %p1199_p6 }
  0xca   : > { %p1202_p9 = pnand %p1201_p8, %p1195_p5 }
  0xcc   : > { %1205 = shalt.err (!%p1202_p9)  }
  0xcd   : > { %194 = dma.hbm_to_vmem [thread:$0]  %s183_s19, 96, %s192_s21, [#allocation3], %s1269_s11, %s1269_s11, %s1270_s14 }
  0xce   : > { %s204_s0 = sshrl.u32 %s195_s20, 3  ;;  %s205_s22 = sand.u32 7, %s195_s20  }
  0xcf   : > { %s206_s2 = smul.u32 48, %s204_s0  ;;  %s198_s7 = sshrl.u32 %s196_s8, 3 }
  0xd0   : > { %s199_s30 = sand.u32 7, %s196_s8   ;;  %s200_s12 = smul.u32 48, %s198_s7 }
  0xd1   : > { %s207_s5 = sadd.s32 %s206_s2, %s205_s22 }
  0xd2   : > { %s209_s16 = scalar_lea.vmem [#allocation2], %s207_s5  ;;  %s201_s25 = sadd.s32 %s200_s12, %s199_s30 }
  0xd3   : > { %s211_s28 = sshll.u32 %s209_s16, 4  ;;  %s985_s29 = sshll.u32 %s201_s25, 4  ;;  %s212_s28 = int_to_ptr.vmem [resolvable:$true] %s211_s28 }
  0xd4   : > { %s203_s18 = scalar_lea.hbm %s1504_s1, %s985_s29 }
  0xd5   : > { %s1206_s26 = scalar_lea.hbm %s203_s18, 96  ;;  %p1209_p11 = scmp.lt.s32.totalorder %s203_s18, %s1504_s1 }
  0xd6   : > { %p1207_p10 = scmp.ne.s32.totalorder %s203_s18, %s1206_s26  ;;  %p1210_p12 = scmp.lt.s32.totalorder %s1338_s27, %s1206_s26 }
  0xd8   : > { %p1211_p13 = por %p1210_p12, %p1209_p11 }
  0xda   : > { %p1212_p0 = pnand %p1211_p13, %p1207_p10 }
  0xdc   : > { %1215 = shalt.err (!%p1212_p0)  }
  0xdd   : > { %s1216_s20 = scalar_lea.vmem %s212_s28, 96  ;;  %p1221_p2 = scmp.lt.s32.totalorder %s212_s28, %s1346_s9 }
  0xde   : > { %p1217_p1 = scmp.ne.s32.totalorder %s212_s28, %s1216_s20  ;;  %p1222_p3 = scmp.lt.s32.totalorder %s1349_s10, %s1216_s20 }
  0xe0   : > { %p1223_p4 = por %p1222_p3, %p1221_p2 }
  0xe2   : > { %p1224_p5 = pnand %p1223_p4, %p1217_p1 }
  0xe4   : > { %1227 = shalt.err (!%p1224_p5)  }
  0xe5   : > { %214 = dma.hbm_to_vmem [thread:$0]  %s203_s18, 96, %s212_s28, [#allocation3], %s1269_s11, %s1269_s11, %s1270_s14 }
  0xe6   : > { %s52_s23 = sadd.s32 1, %s1262_s23  }
  0xe7   : > { %p49_p6 = scmp.ge.s32.totalorder %s52_s23, 16  }
  0xe9   :  { %51 = sbr.rel (!%p49_p6) target bundleno = 30 (0x1e), region = 89 }
  0xee   :  { %1256 = dma.done.wait [#allocation3], 12288 }
  0xef   :  { %1257 = vsyncadd [#allocation3], 4294955008  ;;  %v399_v0 = vld [vmem:[#allocation2] sm:$0xff]  ;;  %v400_v2 = vld [vmem:[#allocation2 + $0x8] sm:$0xff]  ;;  %s1271_s1 = smov [#allocation9]  }
  0xf0   :  { %v495_v1 = vld [vmem:[#allocation6] sm:$0xff]  ;;  %v496_v4 = vld [vmem:[#allocation6 + $0x8] sm:$0xff]  ;;  %v401_v5 = vld [vmem:[#allocation2 + $0x10] sm:$0xff]  ;;  %s793_s23 = sshll.u32 %s1271_s1, 4  ;;  %s794_s23 = int_to_ptr.vmem [resolvable:$true] %s793_s23 }
  0xf1   :  { %v591_v3 = vadd.f32 %v495_v1, %v399_v0  ;;  %v497_v6 = vld [vmem:[#allocation6 + $0x10] sm:$0xff]  ;;  %v592_v7 = vadd.f32 %v496_v4, %v400_v2  ;;  %v402_v9 = vld [vmem:[#allocation2 + $0x18] sm:$0xff]  ;;  %v403_v11 = vld [vmem:[#allocation2 + $0x20] sm:$0xff]  ;;  %s1228_s27 = scalar_lea.vmem %s794_s23, 12288  ;;  %p1233_p8 = scmp.lt.s32.totalorder %s794_s23, %s794_s23 }
  0xf2   :  { %v593_v8 = vadd.f32 %v497_v6, %v401_v5  ;;  %v498_v10 = vld [vmem:[#allocation6 + $0x18] sm:$0xff]  ;;  %v499_v13 = vld [vmem:[#allocation6 + $0x20] sm:$0xff]  ;;  %v404_v14 = vld [vmem:[#allocation2 + $0x28] sm:$0xff]  ;;  %p1229_p7 = scmp.ne.s32.totalorder %s794_s23, %s1228_s27  ;;  %p1234_p9 = scmp.lt.s32.totalorder %s1228_s27, %s1228_s27 }
  0xf3   :  { %687 = vst [vmem:[#allocation9] sm:$0xff] %v591_v3  ;;  %v594_v12 = vadd.f32 %v498_v10, %v402_v9  ;;  %v500_v15 = vld [vmem:[#allocation6 + $0x28] sm:$0xff]  ;;  %688 = vst [vmem:[#allocation9 + $0x8] sm:$0xff] %v592_v7  ;;  %v595_v16 = vadd.f32 %v499_v13, %v403_v11  ;;  %v405_v18 = vld [vmem:[#allocation2 + $0x30] sm:$0xff] }
  0xf4   :  { %689 = vst [vmem:[#allocation9 + $0x10] sm:$0xff] %v593_v8  ;;  %v596_v17 = vadd.f32 %v500_v15, %v404_v14  ;;  %v501_v19 = vld [vmem:[#allocation6 + $0x30] sm:$0xff]  ;;  %v406_v20 = vld [vmem:[#allocation2 + $0x38] sm:$0xff]  ;;  %v407_v23 = vld [vmem:[#allocation2 + $0x40] sm:$0xff]  ;;  %p1235_p10 = por %p1234_p9, %p1233_p8 }
  0xf5   :  { %690 = vst [vmem:[#allocation9 + $0x18] sm:$0xff] %v594_v12  ;;  %v597_v21 = vadd.f32 %v501_v19, %v405_v18  ;;  %v502_v22 = vld [vmem:[#allocation6 + $0x38] sm:$0xff]  ;;  %v503_v24 = vld [vmem:[#allocation6 + $0x40] sm:$0xff]  ;;  %691 = vst [vmem:[#allocation9 + $0x20] sm:$0xff] %v595_v16 }
  0xf6   :  { %692 = vst [vmem:[#allocation9 + $0x28] sm:$0xff] %v596_v17  ;;  %v598_v25 = vadd.f32 %v502_v22, %v406_v20  ;;  %v599_v26 = vadd.f32 %v503_v24, %v407_v23  ;;  %v408_v27 = vld [vmem:[#allocation2 + $0x48] sm:$0xff]  ;;  %v409_v29 = vld [vmem:[#allocation2 + $0x50] sm:$0xff]  ;;  %v410_v32 = vld [vmem:[#allocation2 + $0x58] sm:$0xff]  ;;  %p1236_p11 = pnand %p1235_p10, %p1229_p7 }
  0xf7   :  { %v504_v28 = vld [vmem:[#allocation6 + $0x48] sm:$0xff]  ;;  %693 = vst [vmem:[#allocation9 + $0x30] sm:$0xff] %v597_v21  ;;  %v505_v31 = vld [vmem:[#allocation6 + $0x50] sm:$0xff]  ;;  %v506_v33 = vld [vmem:[#allocation6 + $0x58] sm:$0xff] }
  0xf8   :  { %v600_v30 = vadd.f32 %v504_v28, %v408_v27  ;;  %694 = vst [vmem:[#allocation9 + $0x38] sm:$0xff] %v598_v25  ;;  %695 = vst [vmem:[#allocation9 + $0x40] sm:$0xff] %v599_v26  ;;  %v601_v34 = vadd.f32 %v505_v31, %v409_v29  ;;  %v602_v35 = vadd.f32 %v506_v33, %v410_v32  ;;  %v411_v36 = vld [vmem:[#allocation2 + $0x60] sm:$0xff]  ;;  %v412_v38 = vld [vmem:[#allocation2 + $0x68] sm:$0xff] }
  0xf9   :  { %v507_v37 = vld [vmem:[#allocation6 + $0x60] sm:$0xff]  ;;  %v508_v40 = vld [vmem:[#allocation6 + $0x68] sm:$0xff]  ;;  %v413_v41 = vld [vmem:[#allocation2 + $0x70] sm:$0xff] }
  0xfa   :  { %696 = vst [vmem:[#allocation9 + $0x48] sm:$0xff] %v600_v30  ;;  %v603_v39 = vadd.f32 %v507_v37, %v411_v36  ;;  %v509_v42 = vld [vmem:[#allocation6 + $0x70] sm:$0xff]  ;;  %697 = vst [vmem:[#allocation9 + $0x50] sm:$0xff] %v601_v34  ;;  %v604_v43 = vadd.f32 %v508_v40, %v412_v38  ;;  %v414_v45 = vld [vmem:[#allocation2 + $0x78] sm:$0xff] }
  0xfb   :  { %698 = vst [vmem:[#allocation9 + $0x58] sm:$0xff] %v602_v35  ;;  %v605_v44 = vadd.f32 %v509_v42, %v413_v41  ;;  %v510_v46 = vld [vmem:[#allocation6 + $0x78] sm:$0xff]  ;;  %v415_v47 = vld [vmem:[#allocation2 + $0x80] sm:$0xff]  ;;  %v416_v50 = vld [vmem:[#allocation2 + $0x88] sm:$0xff] }
  0xfc   :  { %699 = vst [vmem:[#allocation9 + $0x60] sm:$0xff] %v603_v39  ;;  %v606_v48 = vadd.f32 %v510_v46, %v414_v45  ;;  %v511_v49 = vld [vmem:[#allocation6 + $0x80] sm:$0xff]  ;;  %v512_v51 = vld [vmem:[#allocation6 + $0x88] sm:$0xff]  ;;  %700 = vst [vmem:[#allocation9 + $0x68] sm:$0xff] %v604_v43 }
  0xfd   :  { %701 = vst [vmem:[#allocation9 + $0x70] sm:$0xff] %v605_v44  ;;  %v607_v52 = vadd.f32 %v511_v49, %v415_v47  ;;  %v608_v53 = vadd.f32 %v512_v51, %v416_v50  ;;  %v417_v54 = vld [vmem:[#allocation2 + $0x90] sm:$0xff]  ;;  %v418_v56 = vld [vmem:[#allocation2 + $0x98] sm:$0xff]  ;;  %v419_v59 = vld [vmem:[#allocation2 + $0xa0] sm:$0xff] }
  0xfe   :  { %v513_v55 = vld [vmem:[#allocation6 + $0x90] sm:$0xff]  ;;  %702 = vst [vmem:[#allocation9 + $0x78] sm:$0xff] %v606_v48  ;;  %v514_v58 = vld [vmem:[#allocation6 + $0x98] sm:$0xff]  ;;  %v515_v60 = vld [vmem:[#allocation6 + $0xa0] sm:$0xff] }
  0xff   :  { %v609_v57 = vadd.f32 %v513_v55, %v417_v54  ;;  %703 = vst [vmem:[#allocation9 + $0x80] sm:$0xff] %v607_v52  ;;  %704 = vst [vmem:[#allocation9 + $0x88] sm:$0xff] %v608_v53  ;;  %v610_v61 = vadd.f32 %v514_v58, %v418_v56  ;;  %v611_v62 = vadd.f32 %v515_v60, %v419_v59  ;;  %v420_v63 = vld [vmem:[#allocation2 + $0xa8] sm:$0xff]  ;;  %v421_v1 = vld [vmem:[#allocation2 + $0xb0] sm:$0xff] }
 0x100   :  { %v516_v0 = vld [vmem:[#allocation6 + $0xa8] sm:$0xff]  ;;  %v517_v3 = vld [vmem:[#allocation6 + $0xb0] sm:$0xff]  ;;  %v422_v4 = vld [vmem:[#allocation2 + $0xb8] sm:$0xff] }
 0x101   :  { %705 = vst [vmem:[#allocation9 + $0x90] sm:$0xff] %v609_v57  ;;  %v612_v2 = vadd.f32 %v516_v0, %v420_v63  ;;  %v518_v5 = vld [vmem:[#allocation6 + $0xb8] sm:$0xff]  ;;  %706 = vst [vmem:[#allocation9 + $0x98] sm:$0xff] %v610_v61  ;;  %v613_v6 = vadd.f32 %v517_v3, %v421_v1  ;;  %v423_v8 = vld [vmem:[#allocation2 + $0xc0] sm:$0xff] }
 0x102   :  { %707 = vst [vmem:[#allocation9 + $0xa0] sm:$0xff] %v611_v62  ;;  %v614_v7 = vadd.f32 %v518_v5, %v422_v4  ;;  %v519_v9 = vld [vmem:[#allocation6 + $0xc0] sm:$0xff]  ;;  %v424_v10 = vld [vmem:[#allocation2 + $0xc8] sm:$0xff]  ;;  %v425_v13 = vld [vmem:[#allocation2 + $0xd0] sm:$0xff] }
 0x103   :  { %708 = vst [vmem:[#allocation9 + $0xa8] sm:$0xff] %v612_v2  ;;  %v615_v11 = vadd.f32 %v519_v9, %v423_v8  ;;  %v520_v12 = vld [vmem:[#allocation6 + $0xc8] sm:$0xff]  ;;  %v521_v14 = vld [vmem:[#allocation6 + $0xd0] sm:$0xff]  ;;  %709 = vst [vmem:[#allocation9 + $0xb0] sm:$0xff] %v613_v6 }
 0x104   :  { %710 = vst [vmem:[#allocation9 + $0xb8] sm:$0xff] %v614_v7  ;;  %v616_v15 = vadd.f32 %v520_v12, %v424_v10  ;;  %v617_v16 = vadd.f32 %v521_v14, %v425_v13  ;;  %v426_v17 = vld [vmem:[#allocation2 + $0xd8] sm:$0xff]  ;;  %v427_v19 = vld [vmem:[#allocation2 + $0xe0] sm:$0xff]  ;;  %v428_v22 = vld [vmem:[#allocation2 + $0xe8] sm:$0xff] }
 0x105   :  { %v522_v18 = vld [vmem:[#allocation6 + $0xd8] sm:$0xff]  ;;  %711 = vst [vmem:[#allocation9 + $0xc0] sm:$0xff] %v615_v11  ;;  %v523_v21 = vld [vmem:[#allocation6 + $0xe0] sm:$0xff]  ;;  %v524_v23 = vld [vmem:[#allocation6 + $0xe8] sm:$0xff] }
 0x106   :  { %v618_v20 = vadd.f32 %v522_v18, %v426_v17  ;;  %712 = vst [vmem:[#allocation9 + $0xc8] sm:$0xff] %v616_v15  ;;  %713 = vst [vmem:[#allocation9 + $0xd0] sm:$0xff] %v617_v16  ;;  %v619_v24 = vadd.f32 %v523_v21, %v427_v19  ;;  %v620_v25 = vadd.f32 %v524_v23, %v428_v22  ;;  %v429_v26 = vld [vmem:[#allocation2 + $0xf0] sm:$0xff]  ;;  %v430_v28 = vld [vmem:[#allocation2 + $0xf8] sm:$0xff] }
 0x107   :  { %v525_v27 = vld [vmem:[#allocation6 + $0xf0] sm:$0xff]  ;;  %v526_v30 = vld [vmem:[#allocation6 + $0xf8] sm:$0xff]  ;;  %v431_v31 = vld [vmem:[#allocation2 + $0x100] sm:$0xff] }
 0x108   :  { %714 = vst [vmem:[#allocation9 + $0xd8] sm:$0xff] %v618_v20  ;;  %v621_v29 = vadd.f32 %v525_v27, %v429_v26  ;;  %v527_v32 = vld [vmem:[#allocation6 + $0x100] sm:$0xff]  ;;  %715 = vst [vmem:[#allocation9 + $0xe0] sm:$0xff] %v619_v24  ;;  %v622_v33 = vadd.f32 %v526_v30, %v430_v28  ;;  %v432_v35 = vld [vmem:[#allocation2 + $0x108] sm:$0xff] }
 0x109   :  { %716 = vst [vmem:[#allocation9 + $0xe8] sm:$0xff] %v620_v25  ;;  %v623_v34 = vadd.f32 %v527_v32, %v431_v31  ;;  %v528_v36 = vld [vmem:[#allocation6 + $0x108] sm:$0xff]  ;;  %v433_v37 = vld [vmem:[#allocation2 + $0x110] sm:$0xff]  ;;  %v434_v40 = vld [vmem:[#allocation2 + $0x118] sm:$0xff] }
 0x10a   :  { %717 = vst [vmem:[#allocation9 + $0xf0] sm:$0xff] %v621_v29  ;;  %v624_v38 = vadd.f32 %v528_v36, %v432_v35  ;;  %v529_v39 = vld [vmem:[#allocation6 + $0x110] sm:$0xff]  ;;  %v530_v41 = vld [vmem:[#allocation6 + $0x118] sm:$0xff]  ;;  %718 = vst [vmem:[#allocation9 + $0xf8] sm:$0xff] %v622_v33 }
 0x10b   :  { %719 = vst [vmem:[#allocation9 + $0x100] sm:$0xff] %v623_v34  ;;  %v625_v42 = vadd.f32 %v529_v39, %v433_v37  ;;  %v626_v43 = vadd.f32 %v530_v41, %v434_v40  ;;  %v435_v44 = vld [vmem:[#allocation2 + $0x120] sm:$0xff]  ;;  %v436_v46 = vld [vmem:[#allocation2 + $0x128] sm:$0xff]  ;;  %v437_v49 = vld [vmem:[#allocation2 + $0x130] sm:$0xff] }
 0x10c   :  { %v531_v45 = vld [vmem:[#allocation6 + $0x120] sm:$0xff]  ;;  %720 = vst [vmem:[#allocation9 + $0x108] sm:$0xff] %v624_v38  ;;  %v532_v48 = vld [vmem:[#allocation6 + $0x128] sm:$0xff]  ;;  %v533_v50 = vld [vmem:[#allocation6 + $0x130] sm:$0xff] }
 0x10d   :  { %v627_v47 = vadd.f32 %v531_v45, %v435_v44  ;;  %721 = vst [vmem:[#allocation9 + $0x110] sm:$0xff] %v625_v42  ;;  %722 = vst [vmem:[#allocation9 + $0x118] sm:$0xff] %v626_v43  ;;  %v628_v51 = vadd.f32 %v532_v48, %v436_v46  ;;  %v629_v52 = vadd.f32 %v533_v50, %v437_v49  ;;  %v438_v53 = vld [vmem:[#allocation2 + $0x138] sm:$0xff]  ;;  %v439_v55 = vld [vmem:[#allocation2 + $0x140] sm:$0xff] }
 0x10e   :  { %v534_v54 = vld [vmem:[#allocation6 + $0x138] sm:$0xff]  ;;  %v535_v57 = vld [vmem:[#allocation6 + $0x140] sm:$0xff]  ;;  %v440_v58 = vld [vmem:[#allocation2 + $0x148] sm:$0xff] }
 0x10f   :  { %723 = vst [vmem:[#allocation9 + $0x120] sm:$0xff] %v627_v47  ;;  %v630_v56 = vadd.f32 %v534_v54, %v438_v53  ;;  %v536_v59 = vld [vmem:[#allocation6 + $0x148] sm:$0xff]  ;;  %724 = vst [vmem:[#allocation9 + $0x128] sm:$0xff] %v628_v51  ;;  %v631_v60 = vadd.f32 %v535_v57, %v439_v55  ;;  %v441_v62 = vld [vmem:[#allocation2 + $0x150] sm:$0xff] }
 0x110   :  { %725 = vst [vmem:[#allocation9 + $0x130] sm:$0xff] %v629_v52  ;;  %v632_v61 = vadd.f32 %v536_v59, %v440_v58  ;;  %v537_v63 = vld [vmem:[#allocation6 + $0x150] sm:$0xff]  ;;  %v442_v0 = vld [vmem:[#allocation2 + $0x158] sm:$0xff]  ;;  %v443_v3 = vld [vmem:[#allocation2 + $0x160] sm:$0xff] }
 0x111   :  { %726 = vst [vmem:[#allocation9 + $0x138] sm:$0xff] %v630_v56  ;;  %v633_v1 = vadd.f32 %v537_v63, %v441_v62  ;;  %v538_v2 = vld [vmem:[#allocation6 + $0x158] sm:$0xff]  ;;  %v539_v4 = vld [vmem:[#allocation6 + $0x160] sm:$0xff]  ;;  %727 = vst [vmem:[#allocation9 + $0x140] sm:$0xff] %v631_v60 }
 0x112   :  { %728 = vst [vmem:[#allocation9 + $0x148] sm:$0xff] %v632_v61  ;;  %v634_v5 = vadd.f32 %v538_v2, %v442_v0  ;;  %v635_v6 = vadd.f32 %v539_v4, %v443_v3  ;;  %v444_v7 = vld [vmem:[#allocation2 + $0x168] sm:$0xff]  ;;  %v445_v9 = vld [vmem:[#allocation2 + $0x170] sm:$0xff]  ;;  %v446_v12 = vld [vmem:[#allocation2 + $0x178] sm:$0xff] }
 0x113   :  { %v540_v8 = vld [vmem:[#allocation6 + $0x168] sm:$0xff]  ;;  %729 = vst [vmem:[#allocation9 + $0x150] sm:$0xff] %v633_v1  ;;  %v541_v11 = vld [vmem:[#allocation6 + $0x170] sm:$0xff]  ;;  %v542_v13 = vld [vmem:[#allocation6 + $0x178] sm:$0xff] }
 0x114   :  { %v636_v10 = vadd.f32 %v540_v8, %v444_v7  ;;  %730 = vst [vmem:[#allocation9 + $0x158] sm:$0xff] %v634_v5  ;;  %731 = vst [vmem:[#allocation9 + $0x160] sm:$0xff] %v635_v6  ;;  %v637_v14 = vadd.f32 %v541_v11, %v445_v9  ;;  %v638_v15 = vadd.f32 %v542_v13, %v446_v12  ;;  %v447_v16 = vld [vmem:[#allocation2 + $0x180] sm:$0xff]  ;;  %v448_v18 = vld [vmem:[#allocation2 + $0x188] sm:$0xff] }
 0x115   :  { %v543_v17 = vld [vmem:[#allocation6 + $0x180] sm:$0xff]  ;;  %v544_v20 = vld [vmem:[#allocation6 + $0x188] sm:$0xff]  ;;  %v449_v21 = vld [vmem:[#allocation2 + $0x190] sm:$0xff] }
 0x116   :  { %732 = vst [vmem:[#allocation9 + $0x168] sm:$0xff] %v636_v10  ;;  %v639_v19 = vadd.f32 %v543_v17, %v447_v16  ;;  %v545_v22 = vld [vmem:[#allocation6 + $0x190] sm:$0xff]  ;;  %733 = vst [vmem:[#allocation9 + $0x170] sm:$0xff] %v637_v14  ;;  %v640_v23 = vadd.f32 %v544_v20, %v448_v18  ;;  %v450_v25 = vld [vmem:[#allocation2 + $0x198] sm:$0xff] }
 0x117   :  { %734 = vst [vmem:[#allocation9 + $0x178] sm:$0xff] %v638_v15  ;;  %v641_v24 = vadd.f32 %v545_v22, %v449_v21  ;;  %v546_v26 = vld [vmem:[#allocation6 + $0x198] sm:$0xff]  ;;  %v451_v27 = vld [vmem:[#allocation2 + $0x1a0] sm:$0xff]  ;;  %v452_v30 = vld [vmem:[#allocation2 + $0x1a8] sm:$0xff] }
 0x118   :  { %735 = vst [vmem:[#allocation9 + $0x180] sm:$0xff] %v639_v19  ;;  %v642_v28 = vadd.f32 %v546_v26, %v450_v25  ;;  %v547_v29 = vld [vmem:[#allocation6 + $0x1a0] sm:$0xff]  ;;  %v548_v31 = vld [vmem:[#allocation6 + $0x1a8] sm:$0xff]  ;;  %736 = vst [vmem:[#allocation9 + $0x188] sm:$0xff] %v640_v23 }
 0x119   :  { %737 = vst [vmem:[#allocation9 + $0x190] sm:$0xff] %v641_v24  ;;  %v643_v32 = vadd.f32 %v547_v29, %v451_v27  ;;  %v644_v33 = vadd.f32 %v548_v31, %v452_v30  ;;  %v453_v34 = vld [vmem:[#allocation2 + $0x1b0] sm:$0xff]  ;;  %v454_v36 = vld [vmem:[#allocation2 + $0x1b8] sm:$0xff]  ;;  %v455_v39 = vld [vmem:[#allocation2 + $0x1c0] sm:$0xff] }
 0x11a   :  { %v549_v35 = vld [vmem:[#allocation6 + $0x1b0] sm:$0xff]  ;;  %738 = vst [vmem:[#allocation9 + $0x198] sm:$0xff] %v642_v28  ;;  %v550_v38 = vld [vmem:[#allocation6 + $0x1b8] sm:$0xff]  ;;  %v551_v40 = vld [vmem:[#allocation6 + $0x1c0] sm:$0xff] }
 0x11b   :  { %v645_v37 = vadd.f32 %v549_v35, %v453_v34  ;;  %739 = vst [vmem:[#allocation9 + $0x1a0] sm:$0xff] %v643_v32  ;;  %740 = vst [vmem:[#allocation9 + $0x1a8] sm:$0xff] %v644_v33  ;;  %v646_v41 = vadd.f32 %v550_v38, %v454_v36  ;;  %v647_v42 = vadd.f32 %v551_v40, %v455_v39  ;;  %v456_v43 = vld [vmem:[#allocation2 + $0x1c8] sm:$0xff]  ;;  %v457_v45 = vld [vmem:[#allocation2 + $0x1d0] sm:$0xff] }
 0x11c   :  { %v552_v44 = vld [vmem:[#allocation6 + $0x1c8] sm:$0xff]  ;;  %v553_v47 = vld [vmem:[#allocation6 + $0x1d0] sm:$0xff]  ;;  %v458_v48 = vld [vmem:[#allocation2 + $0x1d8] sm:$0xff] }
 0x11d   :  { %741 = vst [vmem:[#allocation9 + $0x1b0] sm:$0xff] %v645_v37  ;;  %v648_v46 = vadd.f32 %v552_v44, %v456_v43  ;;  %v554_v49 = vld [vmem:[#allocation6 + $0x1d8] sm:$0xff]  ;;  %742 = vst [vmem:[#allocation9 + $0x1b8] sm:$0xff] %v646_v41  ;;  %v649_v50 = vadd.f32 %v553_v47, %v457_v45  ;;  %v459_v52 = vld [vmem:[#allocation2 + $0x1e0] sm:$0xff] }
 0x11e   :  { %743 = vst [vmem:[#allocation9 + $0x1c0] sm:$0xff] %v647_v42  ;;  %v650_v51 = vadd.f32 %v554_v49, %v458_v48  ;;  %v555_v53 = vld [vmem:[#allocation6 + $0x1e0] sm:$0xff]  ;;  %v460_v54 = vld [vmem:[#allocation2 + $0x1e8] sm:$0xff]  ;;  %v461_v57 = vld [vmem:[#allocation2 + $0x1f0] sm:$0xff] }
 0x11f   :  { %744 = vst [vmem:[#allocation9 + $0x1c8] sm:$0xff] %v648_v46  ;;  %v651_v55 = vadd.f32 %v555_v53, %v459_v52  ;;  %v556_v56 = vld [vmem:[#allocation6 + $0x1e8] sm:$0xff]  ;;  %v557_v58 = vld [vmem:[#allocation6 + $0x1f0] sm:$0xff]  ;;  %745 = vst [vmem:[#allocation9 + $0x1d0] sm:$0xff] %v649_v50 }
 0x120   :  { %746 = vst [vmem:[#allocation9 + $0x1d8] sm:$0xff] %v650_v51  ;;  %v652_v59 = vadd.f32 %v556_v56, %v460_v54  ;;  %v653_v60 = vadd.f32 %v557_v58, %v461_v57  ;;  %v462_v61 = vld [vmem:[#allocation2 + $0x1f8] sm:$0xff]  ;;  %v463_v63 = vld [vmem:[#allocation2 + $0x200] sm:$0xff]  ;;  %v464_v2 = vld [vmem:[#allocation2 + $0x208] sm:$0xff] }
 0x121   :  { %v558_v62 = vld [vmem:[#allocation6 + $0x1f8] sm:$0xff]  ;;  %747 = vst [vmem:[#allocation9 + $0x1e0] sm:$0xff] %v651_v55  ;;  %v559_v1 = vld [vmem:[#allocation6 + $0x200] sm:$0xff]  ;;  %v560_v3 = vld [vmem:[#allocation6 + $0x208] sm:$0xff] }
 0x122   :  { %v654_v0 = vadd.f32 %v558_v62, %v462_v61  ;;  %748 = vst [vmem:[#allocation9 + $0x1e8] sm:$0xff] %v652_v59  ;;  %749 = vst [vmem:[#allocation9 + $0x1f0] sm:$0xff] %v653_v60  ;;  %v655_v4 = vadd.f32 %v559_v1, %v463_v63  ;;  %v656_v5 = vadd.f32 %v560_v3, %v464_v2  ;;  %v465_v6 = vld [vmem:[#allocation2 + $0x210] sm:$0xff]  ;;  %v466_v8 = vld [vmem:[#allocation2 + $0x218] sm:$0xff] }
 0x123   :  { %v561_v7 = vld [vmem:[#allocation6 + $0x210] sm:$0xff]  ;;  %v562_v10 = vld [vmem:[#allocation6 + $0x218] sm:$0xff]  ;;  %v467_v11 = vld [vmem:[#allocation2 + $0x220] sm:$0xff] }
 0x124   :  { %750 = vst [vmem:[#allocation9 + $0x1f8] sm:$0xff] %v654_v0  ;;  %v657_v9 = vadd.f32 %v561_v7, %v465_v6  ;;  %v563_v12 = vld [vmem:[#allocation6 + $0x220] sm:$0xff]  ;;  %751 = vst [vmem:[#allocation9 + $0x200] sm:$0xff] %v655_v4  ;;  %v658_v13 = vadd.f32 %v562_v10, %v466_v8  ;;  %v468_v15 = vld [vmem:[#allocation2 + $0x228] sm:$0xff] }
 0x125   :  { %752 = vst [vmem:[#allocation9 + $0x208] sm:$0xff] %v656_v5  ;;  %v659_v14 = vadd.f32 %v563_v12, %v467_v11  ;;  %v564_v16 = vld [vmem:[#allocation6 + $0x228] sm:$0xff]  ;;  %v469_v17 = vld [vmem:[#allocation2 + $0x230] sm:$0xff]  ;;  %v470_v20 = vld [vmem:[#allocation2 + $0x238] sm:$0xff] }
 0x126   :  { %753 = vst [vmem:[#allocation9 + $0x210] sm:$0xff] %v657_v9  ;;  %v660_v18 = vadd.f32 %v564_v16, %v468_v15  ;;  %v565_v19 = vld [vmem:[#allocation6 + $0x230] sm:$0xff]  ;;  %v566_v21 = vld [vmem:[#allocation6 + $0x238] sm:$0xff]  ;;  %754 = vst [vmem:[#allocation9 + $0x218] sm:$0xff] %v658_v13 }
 0x127   :  { %755 = vst [vmem:[#allocation9 + $0x220] sm:$0xff] %v659_v14  ;;  %v661_v22 = vadd.f32 %v565_v19, %v469_v17  ;;  %v662_v23 = vadd.f32 %v566_v21, %v470_v20  ;;  %v471_v24 = vld [vmem:[#allocation2 + $0x240] sm:$0xff]  ;;  %v472_v26 = vld [vmem:[#allocation2 + $0x248] sm:$0xff]  ;;  %v473_v29 = vld [vmem:[#allocation2 + $0x250] sm:$0xff] }
 0x128   :  { %v567_v25 = vld [vmem:[#allocation6 + $0x240] sm:$0xff]  ;;  %756 = vst [vmem:[#allocation9 + $0x228] sm:$0xff] %v660_v18  ;;  %v568_v28 = vld [vmem:[#allocation6 + $0x248] sm:$0xff]  ;;  %v569_v30 = vld [vmem:[#allocation6 + $0x250] sm:$0xff] }
 0x129   :  { %v663_v27 = vadd.f32 %v567_v25, %v471_v24  ;;  %757 = vst [vmem:[#allocation9 + $0x230] sm:$0xff] %v661_v22  ;;  %758 = vst [vmem:[#allocation9 + $0x238] sm:$0xff] %v662_v23  ;;  %v664_v31 = vadd.f32 %v568_v28, %v472_v26  ;;  %v665_v32 = vadd.f32 %v569_v30, %v473_v29  ;;  %v474_v33 = vld [vmem:[#allocation2 + $0x258] sm:$0xff]  ;;  %v475_v35 = vld [vmem:[#allocation2 + $0x260] sm:$0xff] }
 0x12a   :  { %v570_v34 = vld [vmem:[#allocation6 + $0x258] sm:$0xff]  ;;  %v571_v37 = vld [vmem:[#allocation6 + $0x260] sm:$0xff]  ;;  %v476_v38 = vld [vmem:[#allocation2 + $0x268] sm:$0xff] }
 0x12b   :  { %759 = vst [vmem:[#allocation9 + $0x240] sm:$0xff] %v663_v27  ;;  %v666_v36 = vadd.f32 %v570_v34, %v474_v33  ;;  %v572_v39 = vld [vmem:[#allocation6 + $0x268] sm:$0xff]  ;;  %760 = vst [vmem:[#allocation9 + $0x248] sm:$0xff] %v664_v31  ;;  %v667_v40 = vadd.f32 %v571_v37, %v475_v35  ;;  %v477_v42 = vld [vmem:[#allocation2 + $0x270] sm:$0xff] }
 0x12c   :  { %761 = vst [vmem:[#allocation9 + $0x250] sm:$0xff] %v665_v32  ;;  %v668_v41 = vadd.f32 %v572_v39, %v476_v38  ;;  %v573_v43 = vld [vmem:[#allocation6 + $0x270] sm:$0xff]  ;;  %v478_v44 = vld [vmem:[#allocation2 + $0x278] sm:$0xff]  ;;  %v479_v47 = vld [vmem:[#allocation2 + $0x280] sm:$0xff] }
 0x12d   :  { %762 = vst [vmem:[#allocation9 + $0x258] sm:$0xff] %v666_v36  ;;  %v669_v45 = vadd.f32 %v573_v43, %v477_v42  ;;  %v574_v46 = vld [vmem:[#allocation6 + $0x278] sm:$0xff]  ;;  %v575_v48 = vld [vmem:[#allocation6 + $0x280] sm:$0xff]  ;;  %763 = vst [vmem:[#allocation9 + $0x260] sm:$0xff] %v667_v40 }
 0x12e   :  { %764 = vst [vmem:[#allocation9 + $0x268] sm:$0xff] %v668_v41  ;;  %v670_v49 = vadd.f32 %v574_v46, %v478_v44  ;;  %v671_v50 = vadd.f32 %v575_v48, %v479_v47  ;;  %v480_v51 = vld [vmem:[#allocation2 + $0x288] sm:$0xff]  ;;  %v481_v53 = vld [vmem:[#allocation2 + $0x290] sm:$0xff]  ;;  %v482_v56 = vld [vmem:[#allocation2 + $0x298] sm:$0xff] }
 0x12f   :  { %v576_v52 = vld [vmem:[#allocation6 + $0x288] sm:$0xff]  ;;  %765 = vst [vmem:[#allocation9 + $0x270] sm:$0xff] %v669_v45  ;;  %v577_v55 = vld [vmem:[#allocation6 + $0x290] sm:$0xff]  ;;  %v578_v57 = vld [vmem:[#allocation6 + $0x298] sm:$0xff] }
 0x130   :  { %v672_v54 = vadd.f32 %v576_v52, %v480_v51  ;;  %766 = vst [vmem:[#allocation9 + $0x278] sm:$0xff] %v670_v49  ;;  %767 = vst [vmem:[#allocation9 + $0x280] sm:$0xff] %v671_v50  ;;  %v673_v58 = vadd.f32 %v577_v55, %v481_v53  ;;  %v674_v59 = vadd.f32 %v578_v57, %v482_v56  ;;  %v483_v60 = vld [vmem:[#allocation2 + $0x2a0] sm:$0xff]  ;;  %v484_v62 = vld [vmem:[#allocation2 + $0x2a8] sm:$0xff] }
 0x131   :  { %v579_v61 = vld [vmem:[#allocation6 + $0x2a0] sm:$0xff]  ;;  %v580_v0 = vld [vmem:[#allocation6 + $0x2a8] sm:$0xff]  ;;  %v485_v1 = vld [vmem:[#allocation2 + $0x2b0] sm:$0xff] }
 0x132   :  { %768 = vst [vmem:[#allocation9 + $0x288] sm:$0xff] %v672_v54  ;;  %v675_v63 = vadd.f32 %v579_v61, %v483_v60  ;;  %v581_v2 = vld [vmem:[#allocation6 + $0x2b0] sm:$0xff]  ;;  %769 = vst [vmem:[#allocation9 + $0x290] sm:$0xff] %v673_v58  ;;  %v676_v3 = vadd.f32 %v580_v0, %v484_v62  ;;  %v486_v5 = vld [vmem:[#allocation2 + $0x2b8] sm:$0xff] }
 0x133   :  { %770 = vst [vmem:[#allocation9 + $0x298] sm:$0xff] %v674_v59  ;;  %v677_v4 = vadd.f32 %v581_v2, %v485_v1  ;;  %v582_v6 = vld [vmem:[#allocation6 + $0x2b8] sm:$0xff]  ;;  %v487_v7 = vld [vmem:[#allocation2 + $0x2c0] sm:$0xff]  ;;  %v488_v10 = vld [vmem:[#allocation2 + $0x2c8] sm:$0xff] }
 0x134   :  { %771 = vst [vmem:[#allocation9 + $0x2a0] sm:$0xff] %v675_v63  ;;  %v678_v8 = vadd.f32 %v582_v6, %v486_v5  ;;  %v583_v9 = vld [vmem:[#allocation6 + $0x2c0] sm:$0xff]  ;;  %v584_v11 = vld [vmem:[#allocation6 + $0x2c8] sm:$0xff]  ;;  %772 = vst [vmem:[#allocation9 + $0x2a8] sm:$0xff] %v676_v3 }
 0x135   :  { %773 = vst [vmem:[#allocation9 + $0x2b0] sm:$0xff] %v677_v4  ;;  %v679_v12 = vadd.f32 %v583_v9, %v487_v7  ;;  %v680_v13 = vadd.f32 %v584_v11, %v488_v10  ;;  %v489_v14 = vld [vmem:[#allocation2 + $0x2d0] sm:$0xff]  ;;  %v490_v16 = vld [vmem:[#allocation2 + $0x2d8] sm:$0xff]  ;;  %v491_v19 = vld [vmem:[#allocation2 + $0x2e0] sm:$0xff] }
 0x136   :  { %v585_v15 = vld [vmem:[#allocation6 + $0x2d0] sm:$0xff]  ;;  %774 = vst [vmem:[#allocation9 + $0x2b8] sm:$0xff] %v678_v8  ;;  %v586_v18 = vld [vmem:[#allocation6 + $0x2d8] sm:$0xff]  ;;  %v587_v20 = vld [vmem:[#allocation6 + $0x2e0] sm:$0xff] }
 0x137   :  { %v681_v17 = vadd.f32 %v585_v15, %v489_v14  ;;  %775 = vst [vmem:[#allocation9 + $0x2c0] sm:$0xff] %v679_v12  ;;  %776 = vst [vmem:[#allocation9 + $0x2c8] sm:$0xff] %v680_v13  ;;  %v682_v21 = vadd.f32 %v586_v18, %v490_v16  ;;  %v683_v22 = vadd.f32 %v587_v20, %v491_v19  ;;  %v492_v23 = vld [vmem:[#allocation2 + $0x2e8] sm:$0xff]  ;;  %v493_v25 = vld [vmem:[#allocation2 + $0x2f0] sm:$0xff] }
 0x138   :  { %v588_v24 = vld [vmem:[#allocation6 + $0x2e8] sm:$0xff]  ;;  %v589_v27 = vld [vmem:[#allocation6 + $0x2f0] sm:$0xff]  ;;  %v494_v28 = vld [vmem:[#allocation2 + $0x2f8] sm:$0xff] }
 0x139   :  { %777 = vst [vmem:[#allocation9 + $0x2d0] sm:$0xff] %v681_v17  ;;  %v684_v26 = vadd.f32 %v588_v24, %v492_v23  ;;  %v590_v29 = vld [vmem:[#allocation6 + $0x2f8] sm:$0xff]  ;;  %778 = vst [vmem:[#allocation9 + $0x2d8] sm:$0xff] %v682_v21  ;;  %v685_v30 = vadd.f32 %v589_v27, %v493_v25 }
 0x13a   :  { %779 = vst [vmem:[#allocation9 + $0x2e0] sm:$0xff] %v683_v22  ;;  %v686_v31 = vadd.f32 %v590_v29, %v494_v28 }
 0x13b   :  { %780 = vst [vmem:[#allocation9 + $0x2e8] sm:$0xff] %v684_v26  ;;  %781 = vst [vmem:[#allocation9 + $0x2f0] sm:$0xff] %v685_v30 }
 0x13c   :  { %782 = vst [vmem:[#allocation9 + $0x2f8] sm:$0xff] %v686_v31 }
 0x13d   :  { %1239 = shalt.err (!%p1236_p11)
}
 0x13e   :  { %s1509_s9 = smov 48   ;;  %s1510_s10 = smov 768  }
 0x13f   :  { %799 = dma.vmem_to_hbm [thread:$0]  %s794_s23, 12288, %s1506_s3, [#allocation8], %s1510_s10, %s1510_s10, %s1509_s9  }
 0x140   :  { %1258 = dma.done.wait [#allocation8], 12288  }
 0x141   :  { %1259 = vsyncadd [#allocation8], 4294955008 }
 0x142   :  { %803 = vsyncpa [#allocation7], 1 }
 0x143   :  { %804 = vsyncpa [#allocation8], 1 }
 0x144   :  { %805 = vsyncmov [#allocation3] }
 0x147   :  { %s806_s8 = vpop.sfrf %805 }
 0x148   :  { %p1003_p12 = scmp.ne.s32.totalorder %s806_s8, 0 }
 0x14a   :  { %810 = shalt.err (%p1003_p12)  }
 0x14b   :  { %812 = vsyncmov [#allocation3 + $0x1] }
 0x14e   :  { %s813_s4 = vpop.sfrf %812 }
 0x14f   :  { %p1004_p13 = scmp.ne.s32.totalorder %s813_s4, 0 }
 0x151   :  { %817 = shalt.err (%p1004_p13)  }

</bundles_post_ra>
